<compile_context>
chip_gen: v7x
topology: tpu7x:2x2x1
jax: 0.10.0
libtpu: 0.0.40
codegen_flags: <defaults>
</compile_context>

<pallas_src>
import functools

import numpy as np
import jax
import jax.numpy as jnp
from jax.experimental import pallas as pl
from jax.experimental.pallas import tpu as pltpu


# ----------------------------------------------------------------------------
# Deterministic parameter initialisation (mirrors RocketConv1d.__init__ sampling)
# ----------------------------------------------------------------------------
def init_rocket_params(num_kernels, max_receptive_field, seed=0):
    """Returns list of (kernel_length, dilation, weights[f32], bias[float])."""
    rng = np.random.default_rng(seed)
    kernels = []
    for _ in range(num_kernels):
        k_len = int(rng.choice(np.array([7, 9, 11])))                 # _sample_kernel_length
        upper = np.log2((max_receptive_field - 1) / (k_len - 1))      # _sample_dilation
        dilation = int(2.0 ** rng.uniform(0.0, upper))
        w = rng.normal(0.0, 1.0, size=k_len).astype(np.float32)       # _sample_weights
        w = (w - w.mean()).astype(np.float32)
        b = float(rng.uniform(-1.0, 1.0))                             # _sample_bias
        kernels.append((k_len, dilation, w, b))
    return kernels


def _round_up(x, m):
    return ((x + m - 1) // m) * m


def _vmem_capacity_bytes():
    """Generation-aware VMEM capacity; conservative 64 MiB (v7x) fallback."""
    try:
        cap = int(pltpu.get_tpu_info().vmem_capacity_bytes)
        if cap > 0:
            return cap
    except Exception:
        pass
    return 64 * 1024 * 1024


_NEG_LARGE = -1.0e30   # fills padded band columns (bias row) so max/PPV ignore them


# ----------------------------------------------------------------------------
# Frozen banded conv matrix (host-side constant).
#   y[r, i*ntp + t] = sum_s x_pad[r, s] * band[s, i*ntp + t]
#                   = b_i + sum_j w_ij * x[r, t + j*d_i - pad_i]      (t < n_time)
# Columns t in [n_time, ntp) (lane padding) get -1e30 via the bias row so the max
# reduction over the full ntp slice is unaffected and (y > 0) is False there.
# ----------------------------------------------------------------------------
def _build_band(kernels, n_time, ntp, t_pad_a, max_pad, bias_col, num_kernels_pad):
    band = np.zeros((t_pad_a, num_kernels_pad * ntp), dtype=np.float32)
    t_idx = np.arange(n_time)
    for i, (k_len, dilation, w, b) in enumerate(kernels):
        pad = dilation * (k_len - 1) // 2
        col0 = i * ntp
        for j in range(k_len):
            band[max_pad - pad + j * dilation + t_idx, col0 + t_idx] += float(w[j])
        band[bias_col, col0:col0 + n_time] = b        # bias via the ones column of x
        if ntp > n_time:
            band[bias_col, col0 + n_time:col0 + ntp] = _NEG_LARGE
    return band


def _build_ppv_ones(kg, ntp, n_time):
    """Block-diagonal (kg*ntp, kg) ones matrix: PPV counts via a second MXU matmul."""
    ones = np.zeros((kg * ntp, kg), dtype=np.float32)
    for i in range(kg):
        ones[i * ntp:i * ntp + n_time, i] = 1.0
    return ones


# ----------------------------------------------------------------------------
# Pallas kernel: one MXU matmul (all kernels of the group, 'same' conv + bias folded in),
# PPV counts via a second small MXU matmul, per-kernel max with direct lane stores.
# ----------------------------------------------------------------------------
def _rocket_kernel(x_ref, band_ref, ones_ref, ppv_ref, max_ref, *, kg, ntp, n_time):
    # x_ref:    (row_tile, t_pad_a)     time-padded rows; x[:, bias_col] == 1
    # band_ref: (t_pad_a, kg * ntp)     frozen band matrix block for this kernel group
    # ones_ref: (kg * ntp, kg)          frozen block-diagonal ones (PPV counting)
    # ppv_ref:  (1, row_tile, kg)  f32
    # max_ref:  (1, row_tile, kg)  f32
    y = jnp.dot(x_ref[...], band_ref[...],
                preferred_element_type=jnp.float32)            # 1-pass MXU, f32 accumulate
    pos = (y > 0.0).astype(ones_ref.dtype)
    counts = jnp.dot(pos, ones_ref[...],
                     preferred_element_type=jnp.float32)       # exact 0/1 counts on the MXU
    ppv_ref[0] = counts * jnp.float32(1.0 / n_time)
    for i in range(kg):       # kg is a small, VMEM-budgeted constant, not num_kernels
        # direct single-lane store: bounded live range, no kg-wide concatenate
        max_ref[0, :, i:i + 1] = jnp.max(y[:, i * ntp:(i + 1) * ntp],
                                         axis=-1, keepdims=True)


# ----------------------------------------------------------------------------
# Wrapper
# ----------------------------------------------------------------------------
def rocket_conv1d_forward(x, kernels, *, compute_dtype=jnp.bfloat16):
    """x: (batch, channels, time) or (batch, epochs, channels, time) ->
       (..., 2 * num_kernels) float32.
       compute_dtype=bfloat16 (default): bf16 operands with f32 MXU accumulation.
       compute_dtype=float32: f32 operands, default MXU precision (no HIGHEST)."""
    if x.ndim not in (3, 4):
        raise ValueError(f"Expected 3D or 4D input, got {x.ndim}D")
    lead = x.shape[:-1]
    n_time = int(x.shape[-1])
    num_kernels = len(kernels)
    rows = int(np.prod(lead))

    cd = jnp.dtype(compute_dtype)
    itemsize = int(cd.itemsize)
    sub_min = 16 if itemsize < 4 else 8            # bf16 sublane packing needs (16,128)

    max_pad = max(d * (k - 1) // 2 for k, d, _, _ in kernels)
    t_pad = n_time + 2 * max_pad
    t_pad_a = _round_up(t_pad + 1, 128)            # lane-aligned; +1 reserves bias "ones" col
    bias_col = t_pad
    ntp = _round_up(n_time, 128)                   # per-kernel column-block width
    # TODO(synk): for long time series (n_time >> receptive field) add a time-block grid
    # axis with a shared Toeplitz band block and PPV/max VMEM accumulators (pl.when
    # init/finalize) so the contraction dim stops multiplying mostly-zero band entries.

    # ---- generation-aware VMEM budgets (review: v5e/v6e have 128 MiB, v7x 64 MiB) ----
    vmem_cap = _vmem_capacity_bytes()
    big_vmem = vmem_cap >= 100 * 1024 * 1024
    band_budget = (20 if big_vmem else 6) * 1024 * 1024
    y_budget = (20 if big_vmem else 6) * 1024 * 1024
    vmem_cap_allowed = min((100 if big_vmem else 56) * 1024 * 1024,
                           max(vmem_cap - 8 * 1024 * 1024, 32 * 1024 * 1024))

    # ---- row tiling (bigger tiles on the 128 MiB / low-HBM-BW parts) ----
    if rows >= 512 and big_vmem:
        row_tile = 512
    elif rows >= 256:
        row_tile = 256
    else:
        row_tile = _round_up(max(rows, 1), sub_min)
    rows_pad = _round_up(rows, row_tile)
    n_row_tiles = rows_pad // row_tile

    # ---- kernel-group size: bound band block, matmul intermediates, ppv-ones matrix ----
    kg = int(max(1, min(num_kernels,
                        band_budget // (t_pad_a * ntp * itemsize),
                        y_budget // (row_tile * ntp * (4 + itemsize)))))

    def _vmem_needed(kg_):
        x_blk = row_tile * t_pad_a * itemsize
        band_blk = t_pad_a * kg_ * ntp * itemsize
        ones_blk = kg_ * ntp * kg_ * itemsize
        out_blk = row_tile * kg_ * 4
        y_bytes = row_tile * kg_ * ntp * (4 + itemsize)      # y (f32) + (y>0) cast
        return 2 * x_blk + 2 * band_blk + 2 * ones_blk + 4 * out_blk + y_bytes + (4 << 20)

    while kg > 1 and _vmem_needed(kg) > vmem_cap_allowed:
        kg -= 1
    num_groups = -(-num_kernels // kg)
    num_kernels_pad = num_groups * kg

    band = jnp.asarray(
        _build_band(kernels, n_time, ntp, t_pad_a, max_pad, bias_col, num_kernels_pad),
        dtype=cd)
    ppv_ones = jnp.asarray(_build_ppv_ones(kg, ntp, n_time), dtype=cd)

    # ---- padded input: single concatenate, directly in compute dtype ----
    # Layout: [zeros(max_pad) | x | zeros(max_pad) | ones(1) | zeros(align)]
    x2 = x.reshape(rows, n_time).astype(cd)
    pieces = [jnp.zeros((rows, max_pad), cd), x2, jnp.zeros((rows, max_pad), cd),
              jnp.ones((rows, 1), cd)]
    tail = t_pad_a - t_pad - 1
    if tail > 0:
        pieces.append(jnp.zeros((rows, tail), cd))
    xp = jnp.concatenate(pieces, axis=-1)
    if rows_pad > rows:
        xp = jnp.concatenate([xp, jnp.zeros((rows_pad - rows, t_pad_a), cd)], axis=0)

    # ---- grid order from operand sizes: minimize total HBM streaming ----
    x_bytes = rows_pad * t_pad_a * itemsize
    band_bytes = t_pad_a * num_kernels_pad * ntp * itemsize
    groups_outer = (num_groups * x_bytes + band_bytes) <= (x_bytes + n_row_tiles * band_bytes)

    kernel_fn = functools.partial(_rocket_kernel, kg=kg, ntp=ntp, n_time=n_time)
    out_shape = (jax.ShapeDtypeStruct((num_groups, rows_pad, kg), jnp.float32),
                 jax.ShapeDtypeStruct((num_groups, rows_pad, kg), jnp.float32))
    vmem_limit = int(min(vmem_cap_allowed, max(_vmem_needed(kg), 32 * 1024 * 1024)))

    def _call(band_pipeline_mode):
        band_kwargs = {}
        if band_pipeline_mode is not None:
            band_kwargs["pipeline_mode"] = band_pipeline_mode
        if groups_outer:
            grid = (num_groups, n_row_tiles)
            x_spec = pl.BlockSpec((row_tile, t_pad_a), lambda g, r: (r, 0))
            band_spec = pl.BlockSpec((t_pad_a, kg * ntp), lambda g, r: (0, g), **band_kwargs)
            ones_spec = pl.BlockSpec((kg * ntp, kg), lambda g, r: (0, 0))
            out_spec = pl.BlockSpec((1, row_tile, kg), lambda g, r: (g, r, 0))
        else:
            grid = (n_row_tiles, num_groups)
            x_spec = pl.BlockSpec((row_tile, t_pad_a), lambda r, g: (r, 0))
            band_spec = pl.BlockSpec((t_pad_a, kg * ntp), lambda r, g: (0, g), **band_kwargs)
            ones_spec = pl.BlockSpec((kg * ntp, kg), lambda r, g: (0, 0))
            out_spec = pl.BlockSpec((1, row_tile, kg), lambda r, g: (g, r, 0))
        return pl.pallas_call(
            kernel_fn,
            out_shape=out_shape,
            grid=grid,
            in_specs=[x_spec, band_spec, ones_spec],
            out_specs=(out_spec, out_spec),
            compiler_params=pltpu.CompilerParams(
                dimension_semantics=("parallel", "parallel"),   # disjoint output blocks
                vmem_limit_bytes=vmem_limit,
            ),
        )(xp, band, ppv_ones)

    if groups_outer:
        # Band only changes at group boundaries (outer axis) -> single-buffer it to free
        # VMEM (review, v7x); fall back to default double-buffering if unsupported.
        try:
            ppv, mx = _call(pl.Buffered(1))
        except Exception:
            ppv, mx = _call(None)
    else:
        ppv, mx = _call(None)

    # (num_groups, rows_pad, kg) -> (rows, num_kernels); interleave ppv/max in the wrapper
    ppv = jnp.transpose(ppv, (1, 0, 2)).reshape(rows_pad, num_kernels_pad)[:rows, :num_kernels]
    mx = jnp.transpose(mx, (1, 0, 2)).reshape(rows_pad, num_kernels_pad)[:rows, :num_kernels]
    out = jnp.stack([ppv, mx], axis=-1).reshape(rows, 2 * num_kernels)
    return out.reshape(*lead, 2 * num_kernels)


# ----------------------------------------------------------------------------
# Pure numpy reference (same math as torch conv1d 'same' + compute_ppv_and_max), f32.
# ----------------------------------------------------------------------------
def rocket_reference_conv(x_np, kernels):
    """Returns the raw convolved series per kernel: (rows, num_kernels, n_time) f32."""
    lead = x_np.shape[:-1]
    n_time = x_np.shape[-1]
    rows = int(np.prod(lead))
    x2 = x_np.reshape(rows, n_time).astype(np.float32)
    ys = np.empty((rows, len(kernels), n_time), dtype=np.float32)
    for i, (k_len, dilation, w, b) in enumerate(kernels):
        pad = dilation * (k_len - 1) // 2
        xp = np.pad(x2, ((0, 0), (pad, pad)))
        y = np.full((rows, n_time), b, dtype=np.float32)
        for j in range(k_len):
            y += w[j] * xp[:, j * dilation:j * dilation + n_time]
        ys[:, i] = y
    return ys


if __name__ == "__main__":
    NUM_KERNELS = 8
    MAX_RECEPTIVE_FIELD = 64
    B, C, T = 2, 4, 128

    kernels = init_rocket_params(NUM_KERNELS, MAX_RECEPTIVE_FIELD, seed=0)

    key = jax.random.PRNGKey(0)
    x = jax.random.normal(key, (B, C, T), dtype=jnp.float32)

    # 3D path (default bf16 compute, f32 accumulation)
    out3 = jax.block_until_ready(rocket_conv1d_forward(x, kernels))
    assert out3.shape == (B, C, 2 * NUM_KERNELS)
    out3_np = np.asarray(out3)

    # f32 reference
    ys = rocket_reference_conv(np.asarray(x), kernels)          # (rows, K, T)
    rows = B * C
    ref_max = ys.max(-1)
    ref_ppv = (ys > 0.0).mean(-1)
    dead = 0.1                                                   # bf16-matmul dead band
    ref_ppv_lo = (ys > dead).mean(-1)
    ref_ppv_hi = (ys > -dead).mean(-1)

    got_ppv = out3_np[..., 0::2].reshape(rows, NUM_KERNELS)
    got_max = out3_np[..., 1::2].reshape(rows, NUM_KERNELS)

    # max features: bf16 operand rounding, f32 accumulate
    np.testing.assert_allclose(got_max, ref_max.reshape(rows, NUM_KERNELS),
                               rtol=3e-2, atol=5e-2)
    # ppv features: must lie between the dead-band bounds; close to the exact value
    assert np.all(got_ppv >= ref_ppv_lo.reshape(rows, NUM_KERNELS) - 1e-6)
    assert np.all(got_ppv <= ref_ppv_hi.reshape(rows, NUM_KERNELS) + 1e-6)
    np.testing.assert_allclose(got_ppv, ref_ppv.reshape(rows, NUM_KERNELS), atol=0.1)

    # 4D path (batch, epochs, channels, time) — must match squeezed 3D result exactly
    out4 = jax.block_until_ready(rocket_conv1d_forward(x[:, None, :, :], kernels))
    assert out4.shape == (B, 1, C, 2 * NUM_KERNELS)
    np.testing.assert_array_equal(np.asarray(out4[:, 0]), out3_np)

    print("KERNEL_OK")
</pallas_src>

<mosaic_0001>
module attributes {stable_mosaic.version = 11 : i64} {
  func.func @_rocket_kernel(%arg0: i32, %arg1: i32, %arg2: memref<16x256xbf16, #tpu.memory_space<vmem>>, %arg3: memref<256x1024xbf16, #tpu.memory_space<vmem>>, %arg4: memref<1024x8xbf16, #tpu.memory_space<vmem>>, %arg5: memref<1x16x8xf32, #tpu.memory_space<vmem>>, %arg6: memref<1x16x8xf32, #tpu.memory_space<vmem>>) attributes {dimension_semantics = [#tpu.dimension_semantics<parallel>, #tpu.dimension_semantics<parallel>], iteration_bounds = array<i64: 1, 1>, scalar_prefetch = 0 : i64, scratch_operands = 0 : i64, tpu.core_type = #tpu.core_type<tc>, window_params = [{transform_indices = @transform_0, window_bounds = array<i64: 16, 256>}, {pipeline_mode = #tpu.pipeline_mode<synchronous>, transform_indices = @transform_1, window_bounds = array<i64: 256, 1024>}, {pipeline_mode = #tpu.pipeline_mode<synchronous>, transform_indices = @transform_2, window_bounds = array<i64: 1024, 8>}, {transform_indices = @transform_3, window_bounds = array<i64: 1, 16, 8>}, {transform_indices = @transform_4, window_bounds = array<i64: 1, 16, 8>}]} {
    %c0 = arith.constant 0 : index
    %c0_0 = arith.constant 0 : index
    %0 = vector.load %arg2[%c0, %c0_0] : memref<16x256xbf16, #tpu.memory_space<vmem>>, vector<16x256xbf16>
    %c0_1 = arith.constant 0 : index
    %c0_2 = arith.constant 0 : index
    %1 = vector.load %arg3[%c0_1, %c0_2] : memref<256x1024xbf16, #tpu.memory_space<vmem>>, vector<256x1024xbf16>
    %cst = arith.constant dense<0.000000e+00> : vector<16x1024xf32>
    %2 = tpu.matmul %0, %1, %cst {dimension_numbers = #tpu.dot_dimension_numbers<[1], [0], [0], [1], [0, 0, 1, 1], [], []>} : vector<16x256xbf16>, vector<256x1024xbf16>, vector<16x1024xf32> -> vector<16x1024xf32>
    %cst_3 = arith.constant 0.000000e+00 : f32
    %3 = vector.broadcast %cst_3 : f32 to vector<16x1024xf32>
    %4 = arith.cmpf ogt, %2, %3 : vector<16x1024xf32>
    %5 = arith.extui %4 : vector<16x1024xi1> to vector<16x1024xi32>
    %6 = arith.sitofp %5 : vector<16x1024xi32> to vector<16x1024xf32>
    %7 = arith.truncf %6 : vector<16x1024xf32> to vector<16x1024xbf16>
    %c0_4 = arith.constant 0 : index
    %c0_5 = arith.constant 0 : index
    %8 = vector.load %arg4[%c0_4, %c0_5] : memref<1024x8xbf16, #tpu.memory_space<vmem>>, vector<1024x8xbf16>
    %cst_6 = arith.constant dense<0.000000e+00> : vector<16x8xf32>
    %9 = tpu.matmul %7, %8, %cst_6 {dimension_numbers = #tpu.dot_dimension_numbers<[1], [0], [0], [1], [0, 0, 1, 1], [], []>} : vector<16x1024xbf16>, vector<1024x8xbf16>, vector<16x8xf32> -> vector<16x8xf32>
    %cst_7 = arith.constant 7.812500e-03 : f32
    %10 = vector.broadcast %cst_7 : f32 to vector<16x8xf32>
    %11 = arith.mulf %9, %10 : vector<16x8xf32>
    %c0_8 = arith.constant 0 : index
    %c0_9 = arith.constant 0 : index
    %c0_10 = arith.constant 0 : index
    %12 = vector.load %arg5[%c0_8, %c0_9, %c0_10] : memref<1x16x8xf32, #tpu.memory_space<vmem>>, vector<1x16x8xf32>
    %13 = vector.shape_cast %12 : vector<1x16x8xf32> to vector<16x8xf32>
    %14 = vector.shape_cast %11 : vector<16x8xf32> to vector<1x16x8xf32>
    tpu.vector_store %arg5[%c0_8, %c0_9, %c0_10], %14 {strides = array<i32>} : memref<1x16x8xf32, #tpu.memory_space<vmem>>, vector<1x16x8xf32>,
    %15 = vector.extract_strided_slice %2 {offsets = [0, 0], sizes = [16, 128], strides = [1, 1]} : vector<16x1024xf32> to vector<16x128xf32>
    %cst_11 = arith.constant dense<0xFF800000> : vector<16xf32>
    %16 = vector.multi_reduction <maximumf>, %15, %cst_11 [1] : vector<16x128xf32> to vector<16xf32>
    %17 = vector.shape_cast %16 : vector<16xf32> to vector<16x1xf32>
    %c0_12 = arith.constant 0 : index
    %c0_13 = arith.constant 0 : index
    %c0_14 = arith.constant 0 : index
    %18 = vector.load %arg6[%c0_12, %c0_13, %c0_14] : memref<1x16x8xf32, #tpu.memory_space<vmem>>, vector<1x16x1xf32>
    %19 = vector.shape_cast %18 : vector<1x16x1xf32> to vector<16x1xf32>
    %20 = vector.shape_cast %17 : vector<16x1xf32> to vector<1x16x1xf32>
    tpu.vector_store %arg6[%c0_12, %c0_13, %c0_14], %20 {strides = array<i32>} : memref<1x16x8xf32, #tpu.memory_space<vmem>>, vector<1x16x1xf32>,
    %21 = vector.extract_strided_slice %2 {offsets = [0, 128], sizes = [16, 128], strides = [1, 1]} : vector<16x1024xf32> to vector<16x128xf32>
    %cst_15 = arith.constant dense<0xFF800000> : vector<16xf32>
    %22 = vector.multi_reduction <maximumf>, %21, %cst_15 [1] : vector<16x128xf32> to vector<16xf32>
    %23 = vector.shape_cast %22 : vector<16xf32> to vector<16x1xf32>
    %c0_16 = arith.constant 0 : index
    %c0_17 = arith.constant 0 : index
    %c1 = arith.constant 1 : index
    %24 = vector.load %arg6[%c0_16, %c0_17, %c1] : memref<1x16x8xf32, #tpu.memory_space<vmem>>, vector<1x16x1xf32>
    %25 = vector.shape_cast %24 : vector<1x16x1xf32> to vector<16x1xf32>
    %26 = vector.shape_cast %23 : vector<16x1xf32> to vector<1x16x1xf32>
    tpu.vector_store %arg6[%c0_16, %c0_17, %c1], %26 {strides = array<i32>} : memref<1x16x8xf32, #tpu.memory_space<vmem>>, vector<1x16x1xf32>,
    %27 = vector.extract_strided_slice %2 {offsets = [0, 256], sizes = [16, 128], strides = [1, 1]} : vector<16x1024xf32> to vector<16x128xf32>
    %cst_18 = arith.constant dense<0xFF800000> : vector<16xf32>
    %28 = vector.multi_reduction <maximumf>, %27, %cst_18 [1] : vector<16x128xf32> to vector<16xf32>
    %29 = vector.shape_cast %28 : vector<16xf32> to vector<16x1xf32>
    %c0_19 = arith.constant 0 : index
    %c0_20 = arith.constant 0 : index
    %c2 = arith.constant 2 : index
    %30 = vector.load %arg6[%c0_19, %c0_20, %c2] : memref<1x16x8xf32, #tpu.memory_space<vmem>>, vector<1x16x1xf32>
    %31 = vector.shape_cast %30 : vector<1x16x1xf32> to vector<16x1xf32>
    %32 = vector.shape_cast %29 : vector<16x1xf32> to vector<1x16x1xf32>
    tpu.vector_store %arg6[%c0_19, %c0_20, %c2], %32 {strides = array<i32>} : memref<1x16x8xf32, #tpu.memory_space<vmem>>, vector<1x16x1xf32>,
    %33 = vector.extract_strided_slice %2 {offsets = [0, 384], sizes = [16, 128], strides = [1, 1]} : vector<16x1024xf32> to vector<16x128xf32>
    %cst_21 = arith.constant dense<0xFF800000> : vector<16xf32>
    %34 = vector.multi_reduction <maximumf>, %33, %cst_21 [1] : vector<16x128xf32> to vector<16xf32>
    %35 = vector.shape_cast %34 : vector<16xf32> to vector<16x1xf32>
    %c0_22 = arith.constant 0 : index
    %c0_23 = arith.constant 0 : index
    %c3 = arith.constant 3 : index
    %36 = vector.load %arg6[%c0_22, %c0_23, %c3] : memref<1x16x8xf32, #tpu.memory_space<vmem>>, vector<1x16x1xf32>
    %37 = vector.shape_cast %36 : vector<1x16x1xf32> to vector<16x1xf32>
    %38 = vector.shape_cast %35 : vector<16x1xf32> to vector<1x16x1xf32>
    tpu.vector_store %arg6[%c0_22, %c0_23, %c3], %38 {strides = array<i32>} : memref<1x16x8xf32, #tpu.memory_space<vmem>>, vector<1x16x1xf32>,
    %39 = vector.extract_strided_slice %2 {offsets = [0, 512], sizes = [16, 128], strides = [1, 1]} : vector<16x1024xf32> to vector<16x128xf32>
    %cst_24 = arith.constant dense<0xFF800000> : vector<16xf32>
    %40 = vector.multi_reduction <maximumf>, %39, %cst_24 [1] : vector<16x128xf32> to vector<16xf32>
    %41 = vector.shape_cast %40 : vector<16xf32> to vector<16x1xf32>
    %c0_25 = arith.constant 0 : index
    %c0_26 = arith.constant 0 : index
    %c4 = arith.constant 4 : index
    %42 = vector.load %arg6[%c0_25, %c0_26, %c4] : memref<1x16x8xf32, #tpu.memory_space<vmem>>, vector<1x16x1xf32>
    %43 = vector.shape_cast %42 : vector<1x16x1xf32> to vector<16x1xf32>
    %44 = vector.shape_cast %41 : vector<16x1xf32> to vector<1x16x1xf32>
    tpu.vector_store %arg6[%c0_25, %c0_26, %c4], %44 {strides = array<i32>} : memref<1x16x8xf32, #tpu.memory_space<vmem>>, vector<1x16x1xf32>,
    %45 = vector.extract_strided_slice %2 {offsets = [0, 640], sizes = [16, 128], strides = [1, 1]} : vector<16x1024xf32> to vector<16x128xf32>
    %cst_27 = arith.constant dense<0xFF800000> : vector<16xf32>
    %46 = vector.multi_reduction <maximumf>, %45, %cst_27 [1] : vector<16x128xf32> to vector<16xf32>
    %47 = vector.shape_cast %46 : vector<16xf32> to vector<16x1xf32>
    %c0_28 = arith.constant 0 : index
    %c0_29 = arith.constant 0 : index
    %c5 = arith.constant 5 : index
    %48 = vector.load %arg6[%c0_28, %c0_29, %c5] : memref<1x16x8xf32, #tpu.memory_space<vmem>>, vector<1x16x1xf32>
    %49 = vector.shape_cast %48 : vector<1x16x1xf32> to vector<16x1xf32>
    %50 = vector.shape_cast %47 : vector<16x1xf32> to vector<1x16x1xf32>
    tpu.vector_store %arg6[%c0_28, %c0_29, %c5], %50 {strides = array<i32>} : memref<1x16x8xf32, #tpu.memory_space<vmem>>, vector<1x16x1xf32>,
    %51 = vector.extract_strided_slice %2 {offsets = [0, 768], sizes = [16, 128], strides = [1, 1]} : vector<16x1024xf32> to vector<16x128xf32>
    %cst_30 = arith.constant dense<0xFF800000> : vector<16xf32>
    %52 = vector.multi_reduction <maximumf>, %51, %cst_30 [1] : vector<16x128xf32> to vector<16xf32>
    %53 = vector.shape_cast %52 : vector<16xf32> to vector<16x1xf32>
    %c0_31 = arith.constant 0 : index
    %c0_32 = arith.constant 0 : index
    %c6 = arith.constant 6 : index
    %54 = vector.load %arg6[%c0_31, %c0_32, %c6] : memref<1x16x8xf32, #tpu.memory_space<vmem>>, vector<1x16x1xf32>
    %55 = vector.shape_cast %54 : vector<1x16x1xf32> to vector<16x1xf32>
    %56 = vector.shape_cast %53 : vector<16x1xf32> to vector<1x16x1xf32>
    tpu.vector_store %arg6[%c0_31, %c0_32, %c6], %56 {strides = array<i32>} : memref<1x16x8xf32, #tpu.memory_space<vmem>>, vector<1x16x1xf32>,
    %57 = vector.extract_strided_slice %2 {offsets = [0, 896], sizes = [16, 128], strides = [1, 1]} : vector<16x1024xf32> to vector<16x128xf32>
    %cst_33 = arith.constant dense<0xFF800000> : vector<16xf32>
    %58 = vector.multi_reduction <maximumf>, %57, %cst_33 [1] : vector<16x128xf32> to vector<16xf32>
    %59 = vector.shape_cast %58 : vector<16xf32> to vector<16x1xf32>
    %c0_34 = arith.constant 0 : index
    %c0_35 = arith.constant 0 : index
    %c7 = arith.constant 7 : index
    %60 = vector.load %arg6[%c0_34, %c0_35, %c7] : memref<1x16x8xf32, #tpu.memory_space<vmem>>, vector<1x16x1xf32>
    %61 = vector.shape_cast %60 : vector<1x16x1xf32> to vector<16x1xf32>
    %62 = vector.shape_cast %59 : vector<16x1xf32> to vector<1x16x1xf32>
    tpu.vector_store %arg6[%c0_34, %c0_35, %c7], %62 {strides = array<i32>} : memref<1x16x8xf32, #tpu.memory_space<vmem>>, vector<1x16x1xf32>,
    return
  }
  func.func @transform_0(%arg0: i32, %arg1: i32) -> (i32, i32) {
    %c0_i32 = arith.constant 0 : i32
    %c0_i32_0 = arith.constant 0 : i32
    return %arg1, %c0_i32 : i32, i32
  }
  func.func @transform_1(%arg0: i32, %arg1: i32) -> (i32, i32) {
    %c0_i32 = arith.constant 0 : i32
    %c0_i32_0 = arith.constant 0 : i32
    return %c0_i32, %arg0 : i32, i32
  }
  func.func @transform_2(%arg0: i32, %arg1: i32) -> (i32, i32) {
    %c0_i32 = arith.constant 0 : i32
    %c0_i32_0 = arith.constant 0 : i32
    %c0_i32_1 = arith.constant 0 : i32
    return %c0_i32, %c0_i32_0 : i32, i32
  }
  func.func @transform_3(%arg0: i32, %arg1: i32) -> (i32, i32, i32) {
    %c0_i32 = arith.constant 0 : i32
    %c0_i32_0 = arith.constant 0 : i32
    return %arg0, %arg1, %c0_i32 : i32, i32, i32
  }
  func.func @transform_4(%arg0: i32, %arg1: i32) -> (i32, i32, i32) {
    %c0_i32 = arith.constant 0 : i32
    %c0_i32_0 = arith.constant 0 : i32
    return %arg0, %arg1, %c0_i32 : i32, i32, i32
  }
}

module attributes {stable_mosaic.version = 11 : i64} {
  func.func @_rocket_kernel(%arg0: i32, %arg1: i32, %arg2: memref<16x256xbf16, #tpu.memory_space<vmem>>, %arg3: memref<256x1024xbf16, #tpu.memory_space<vmem>>, %arg4: memref<1024x8xbf16, #tpu.memory_space<vmem>>, %arg5: memref<1x16x8xf32, #tpu.memory_space<vmem>>, %arg6: memref<1x16x8xf32, #tpu.memory_space<vmem>>) attributes {dimension_semantics = [#tpu.dimension_semantics<parallel>, #tpu.dimension_semantics<parallel>], iteration_bounds = array<i64: 1, 1>, scalar_prefetch = 0 : i64, scratch_operands = 0 : i64, tpu.core_type = #tpu.core_type<tc>, window_params = [{transform_indices = @transform_0, window_bounds = array<i64: 16, 256>}, {transform_indices = @transform_1, window_bounds = array<i64: 256, 1024>}, {pipeline_mode = #tpu.pipeline_mode<synchronous>, transform_indices = @transform_2, window_bounds = array<i64: 1024, 8>}, {transform_indices = @transform_3, window_bounds = array<i64: 1, 16, 8>}, {transform_indices = @transform_4, window_bounds = array<i64: 1, 16, 8>}]} {
    %c0 = arith.constant 0 : index
    %c0_0 = arith.constant 0 : index
    %0 = vector.load %arg2[%c0, %c0_0] : memref<16x256xbf16, #tpu.memory_space<vmem>>, vector<16x256xbf16>
    %c0_1 = arith.constant 0 : index
    %c0_2 = arith.constant 0 : index
    %1 = vector.load %arg3[%c0_1, %c0_2] : memref<256x1024xbf16, #tpu.memory_space<vmem>>, vector<256x1024xbf16>
    %cst = arith.constant dense<0.000000e+00> : vector<16x1024xf32>
    %2 = tpu.matmul %0, %1, %cst {dimension_numbers = #tpu.dot_dimension_numbers<[1], [0], [0], [1], [0, 0, 1, 1], [], []>} : vector<16x256xbf16>, vector<256x1024xbf16>, vector<16x1024xf32> -> vector<16x1024xf32>
    %cst_3 = arith.constant 0.000000e+00 : f32
    %3 = vector.broadcast %cst_3 : f32 to vector<16x1024xf32>
    %4 = arith.cmpf ogt, %2, %3 : vector<16x1024xf32>
    %5 = arith.extui %4 : vector<16x1024xi1> to vector<16x1024xi32>
    %6 = arith.sitofp %5 : vector<16x1024xi32> to vector<16x1024xf32>
    %7 = arith.truncf %6 : vector<16x1024xf32> to vector<16x1024xbf16>
    %c0_4 = arith.constant 0 : index
    %c0_5 = arith.constant 0 : index
    %8 = vector.load %arg4[%c0_4, %c0_5] : memref<1024x8xbf16, #tpu.memory_space<vmem>>, vector<1024x8xbf16>
    %cst_6 = arith.constant dense<0.000000e+00> : vector<16x8xf32>
    %9 = tpu.matmul %7, %8, %cst_6 {dimension_numbers = #tpu.dot_dimension_numbers<[1], [0], [0], [1], [0, 0, 1, 1], [], []>} : vector<16x1024xbf16>, vector<1024x8xbf16>, vector<16x8xf32> -> vector<16x8xf32>
    %cst_7 = arith.constant 7.812500e-03 : f32
    %10 = vector.broadcast %cst_7 : f32 to vector<16x8xf32>
    %11 = arith.mulf %9, %10 : vector<16x8xf32>
    %c0_8 = arith.constant 0 : index
    %c0_9 = arith.constant 0 : index
    %c0_10 = arith.constant 0 : index
    %12 = vector.load %arg5[%c0_8, %c0_9, %c0_10] : memref<1x16x8xf32, #tpu.memory_space<vmem>>, vector<1x16x8xf32>
    %13 = vector.shape_cast %12 : vector<1x16x8xf32> to vector<16x8xf32>
    %14 = vector.shape_cast %11 : vector<16x8xf32> to vector<1x16x8xf32>
    tpu.vector_store %arg5[%c0_8, %c0_9, %c0_10], %14 {strides = array<i32>} : memref<1x16x8xf32, #tpu.memory_space<vmem>>, vector<1x16x8xf32>,
    %15 = vector.extract_strided_slice %2 {offsets = [0, 0], sizes = [16, 128], strides = [1, 1]} : vector<16x1024xf32> to vector<16x128xf32>
    %cst_11 = arith.constant dense<0xFF800000> : vector<16xf32>
    %16 = vector.multi_reduction <maximumf>, %15, %cst_11 [1] : vector<16x128xf32> to vector<16xf32>
    %17 = vector.shape_cast %16 : vector<16xf32> to vector<16x1xf32>
    %c0_12 = arith.constant 0 : index
    %c0_13 = arith.constant 0 : index
    %c0_14 = arith.constant 0 : index
    %18 = vector.load %arg6[%c0_12, %c0_13, %c0_14] : memref<1x16x8xf32, #tpu.memory_space<vmem>>, vector<1x16x1xf32>
    %19 = vector.shape_cast %18 : vector<1x16x1xf32> to vector<16x1xf32>
    %20 = vector.shape_cast %17 : vector<16x1xf32> to vector<1x16x1xf32>
    tpu.vector_store %arg6[%c0_12, %c0_13, %c0_14], %20 {strides = array<i32>} : memref<1x16x8xf32, #tpu.memory_space<vmem>>, vector<1x16x1xf32>,
    %21 = vector.extract_strided_slice %2 {offsets = [0, 128], sizes = [16, 128], strides = [1, 1]} : vector<16x1024xf32> to vector<16x128xf32>
    %cst_15 = arith.constant dense<0xFF800000> : vector<16xf32>
    %22 = vector.multi_reduction <maximumf>, %21, %cst_15 [1] : vector<16x128xf32> to vector<16xf32>
    %23 = vector.shape_cast %22 : vector<16xf32> to vector<16x1xf32>
    %c0_16 = arith.constant 0 : index
    %c0_17 = arith.constant 0 : index
    %c1 = arith.constant 1 : index
    %24 = vector.load %arg6[%c0_16, %c0_17, %c1] : memref<1x16x8xf32, #tpu.memory_space<vmem>>, vector<1x16x1xf32>
    %25 = vector.shape_cast %24 : vector<1x16x1xf32> to vector<16x1xf32>
    %26 = vector.shape_cast %23 : vector<16x1xf32> to vector<1x16x1xf32>
    tpu.vector_store %arg6[%c0_16, %c0_17, %c1], %26 {strides = array<i32>} : memref<1x16x8xf32, #tpu.memory_space<vmem>>, vector<1x16x1xf32>,
    %27 = vector.extract_strided_slice %2 {offsets = [0, 256], sizes = [16, 128], strides = [1, 1]} : vector<16x1024xf32> to vector<16x128xf32>
    %cst_18 = arith.constant dense<0xFF800000> : vector<16xf32>
    %28 = vector.multi_reduction <maximumf>, %27, %cst_18 [1] : vector<16x128xf32> to vector<16xf32>
    %29 = vector.shape_cast %28 : vector<16xf32> to vector<16x1xf32>
    %c0_19 = arith.constant 0 : index
    %c0_20 = arith.constant 0 : index
    %c2 = arith.constant 2 : index
    %30 = vector.load %arg6[%c0_19, %c0_20, %c2] : memref<1x16x8xf32, #tpu.memory_space<vmem>>, vector<1x16x1xf32>
    %31 = vector.shape_cast %30 : vector<1x16x1xf32> to vector<16x1xf32>
    %32 = vector.shape_cast %29 : vector<16x1xf32> to vector<1x16x1xf32>
    tpu.vector_store %arg6[%c0_19, %c0_20, %c2], %32 {strides = array<i32>} : memref<1x16x8xf32, #tpu.memory_space<vmem>>, vector<1x16x1xf32>,
    %33 = vector.extract_strided_slice %2 {offsets = [0, 384], sizes = [16, 128], strides = [1, 1]} : vector<16x1024xf32> to vector<16x128xf32>
    %cst_21 = arith.constant dense<0xFF800000> : vector<16xf32>
    %34 = vector.multi_reduction <maximumf>, %33, %cst_21 [1] : vector<16x128xf32> to vector<16xf32>
    %35 = vector.shape_cast %34 : vector<16xf32> to vector<16x1xf32>
    %c0_22 = arith.constant 0 : index
    %c0_23 = arith.constant 0 : index
    %c3 = arith.constant 3 : index
    %36 = vector.load %arg6[%c0_22, %c0_23, %c3] : memref<1x16x8xf32, #tpu.memory_space<vmem>>, vector<1x16x1xf32>
    %37 = vector.shape_cast %36 : vector<1x16x1xf32> to vector<16x1xf32>
    %38 = vector.shape_cast %35 : vector<16x1xf32> to vector<1x16x1xf32>
    tpu.vector_store %arg6[%c0_22, %c0_23, %c3], %38 {strides = array<i32>} : memref<1x16x8xf32, #tpu.memory_space<vmem>>, vector<1x16x1xf32>,
    %39 = vector.extract_strided_slice %2 {offsets = [0, 512], sizes = [16, 128], strides = [1, 1]} : vector<16x1024xf32> to vector<16x128xf32>
    %cst_24 = arith.constant dense<0xFF800000> : vector<16xf32>
    %40 = vector.multi_reduction <maximumf>, %39, %cst_24 [1] : vector<16x128xf32> to vector<16xf32>
    %41 = vector.shape_cast %40 : vector<16xf32> to vector<16x1xf32>
    %c0_25 = arith.constant 0 : index
    %c0_26 = arith.constant 0 : index
    %c4 = arith.constant 4 : index
    %42 = vector.load %arg6[%c0_25, %c0_26, %c4] : memref<1x16x8xf32, #tpu.memory_space<vmem>>, vector<1x16x1xf32>
    %43 = vector.shape_cast %42 : vector<1x16x1xf32> to vector<16x1xf32>
    %44 = vector.shape_cast %41 : vector<16x1xf32> to vector<1x16x1xf32>
    tpu.vector_store %arg6[%c0_25, %c0_26, %c4], %44 {strides = array<i32>} : memref<1x16x8xf32, #tpu.memory_space<vmem>>, vector<1x16x1xf32>,
    %45 = vector.extract_strided_slice %2 {offsets = [0, 640], sizes = [16, 128], strides = [1, 1]} : vector<16x1024xf32> to vector<16x128xf32>
    %cst_27 = arith.constant dense<0xFF800000> : vector<16xf32>
    %46 = vector.multi_reduction <maximumf>, %45, %cst_27 [1] : vector<16x128xf32> to vector<16xf32>
    %47 = vector.shape_cast %46 : vector<16xf32> to vector<16x1xf32>
    %c0_28 = arith.constant 0 : index
    %c0_29 = arith.constant 0 : index
    %c5 = arith.constant 5 : index
    %48 = vector.load %arg6[%c0_28, %c0_29, %c5] : memref<1x16x8xf32, #tpu.memory_space<vmem>>, vector<1x16x1xf32>
    %49 = vector.shape_cast %48 : vector<1x16x1xf32> to vector<16x1xf32>
    %50 = vector.shape_cast %47 : vector<16x1xf32> to vector<1x16x1xf32>
    tpu.vector_store %arg6[%c0_28, %c0_29, %c5], %50 {strides = array<i32>} : memref<1x16x8xf32, #tpu.memory_space<vmem>>, vector<1x16x1xf32>,
    %51 = vector.extract_strided_slice %2 {offsets = [0, 768], sizes = [16, 128], strides = [1, 1]} : vector<16x1024xf32> to vector<16x128xf32>
    %cst_30 = arith.constant dense<0xFF800000> : vector<16xf32>
    %52 = vector.multi_reduction <maximumf>, %51, %cst_30 [1] : vector<16x128xf32> to vector<16xf32>
    %53 = vector.shape_cast %52 : vector<16xf32> to vector<16x1xf32>
    %c0_31 = arith.constant 0 : index
    %c0_32 = arith.constant 0 : index
    %c6 = arith.constant 6 : index
    %54 = vector.load %arg6[%c0_31, %c0_32, %c6] : memref<1x16x8xf32, #tpu.memory_space<vmem>>, vector<1x16x1xf32>
    %55 = vector.shape_cast %54 : vector<1x16x1xf32> to vector<16x1xf32>
    %56 = vector.shape_cast %53 : vector<16x1xf32> to vector<1x16x1xf32>
    tpu.vector_store %arg6[%c0_31, %c0_32, %c6], %56 {strides = array<i32>} : memref<1x16x8xf32, #tpu.memory_space<vmem>>, vector<1x16x1xf32>,
    %57 = vector.extract_strided_slice %2 {offsets = [0, 896], sizes = [16, 128], strides = [1, 1]} : vector<16x1024xf32> to vector<16x128xf32>
    %cst_33 = arith.constant dense<0xFF800000> : vector<16xf32>
    %58 = vector.multi_reduction <maximumf>, %57, %cst_33 [1] : vector<16x128xf32> to vector<16xf32>
    %59 = vector.shape_cast %58 : vector<16xf32> to vector<16x1xf32>
    %c0_34 = arith.constant 0 : index
    %c0_35 = arith.constant 0 : index
    %c7 = arith.constant 7 : index
    %60 = vector.load %arg6[%c0_34, %c0_35, %c7] : memref<1x16x8xf32, #tpu.memory_space<vmem>>, vector<1x16x1xf32>
    %61 = vector.shape_cast %60 : vector<1x16x1xf32> to vector<16x1xf32>
    %62 = vector.shape_cast %59 : vector<16x1xf32> to vector<1x16x1xf32>
    tpu.vector_store %arg6[%c0_34, %c0_35, %c7], %62 {strides = array<i32>} : memref<1x16x8xf32, #tpu.memory_space<vmem>>, vector<1x16x1xf32>,
    return
  }
  func.func @transform_0(%arg0: i32, %arg1: i32) -> (i32, i32) {
    %c0_i32 = arith.constant 0 : i32
    %c0_i32_0 = arith.constant 0 : i32
    return %arg1, %c0_i32 : i32, i32
  }
  func.func @transform_1(%arg0: i32, %arg1: i32) -> (i32, i32) {
    %c0_i32 = arith.constant 0 : i32
    %c0_i32_0 = arith.constant 0 : i32
    return %c0_i32, %arg0 : i32, i32
  }
  func.func @transform_2(%arg0: i32, %arg1: i32) -> (i32, i32) {
    %c0_i32 = arith.constant 0 : i32
    %c0_i32_0 = arith.constant 0 : i32
    %c0_i32_1 = arith.constant 0 : i32
    return %c0_i32, %c0_i32_0 : i32, i32
  }
  func.func @transform_3(%arg0: i32, %arg1: i32) -> (i32, i32, i32) {
    %c0_i32 = arith.constant 0 : i32
    %c0_i32_0 = arith.constant 0 : i32
    return %arg0, %arg1, %c0_i32 : i32, i32, i32
  }
  func.func @transform_4(%arg0: i32, %arg1: i32) -> (i32, i32, i32) {
    %c0_i32 = arith.constant 0 : i32
    %c0_i32_0 = arith.constant 0 : i32
    return %arg0, %arg1, %c0_i32 : i32, i32, i32
  }
}

</mosaic_0001>

<bundles_post_ra>
// kernel: tpu_custom_call.1
= control target key start
LH: loop header
LB: loop body
LE: loop exit
PB: predicated region body
PF: predicated region fallthrough
CT: control target
= control target key end

     0   :  { %10 = vsyncpa [#allocation3], 0  ;;  %s2194_s15 = smov [#allocation2]   ;;  %s2513_s0 = inlined_call_operand.vmem [shape: bf16[16,256], index: 0, kind: input, shape index: {}]   ;;  %s2514_s1 = inlined_call_operand.hbm [shape: bf16[256,1024], index: 1, kind: input, shape index: {}]   ;;  %s2515_s2 = inlined_call_operand.vmem [shape: bf16[1024,8], index: 2, kind: input, shape index: {}]   ;;  %s2516_s3 = inlined_call_operand.vmem [shape: f32[1,16,8], index: 3, kind: output, shape index: {0}]   ;;  %s2517_s4 = inlined_call_operand.vmem [shape: f32[1,16,8], index: 4, kind: output, shape index: {1}]  }
   0x1   :  { %s18_s16 = sshll.u32 %s2194_s15, 4  ;;  %s2170_s19 = scalar_lea.hbm %s2514_s1, 16384  ;;  %s19_s16 = int_to_ptr.vmem [resolvable:$true] %s18_s16 }
   0x2   :  { %p2171_p0 = scmp.ne.s32.totalorder %s2514_s1, %s2170_s19  ;;  %p2174_p1 = scmp.lt.u32.totalorder %s2170_s19, %s2514_s1 }
   0x4   :  { %p2176_p2 = pnand %p2174_p1, %p2171_p0 }
   0x6   :  { %2179 = shalt.err (!%p2176_p2)
}
   0x7   :  { %s2180_s24 = scalar_lea.vmem %s19_s16, 16384  ;;  %p2185_p4 = scmp.lt.s32.totalorder %s19_s16, %s19_s16 }
   0x8   :  { %p2181_p3 = scmp.ne.s32.totalorder %s19_s16, %s2180_s24  ;;  %p2186_p5 = scmp.lt.s32.totalorder %s2180_s24, %s2180_s24 }
   0xa   :  { %p2187_p6 = por %p2186_p5, %p2185_p4 }
   0xc   :  { %p2188_p7 = pnand %p2187_p6, %p2181_p3 }
   0xe   :  { %2191 = shalt.err (!%p2188_p7)
}
   0xf   :  { %s2195_s25 = smov 512   ;;  %s2196_s26 = smov 32  }
  0x10   :  { %24 = dma.hbm_to_vmem [thread:$0]  %s2514_s1, 16384, %s19_s16, [#allocation3], %s2195_s25, %s2195_s25, %s2196_s26  }
  0x11   :  { %2192 = dma.done.wait [#allocation3], 16384  }
  0x12   :  { %2193 = vsyncadd [#allocation3], 4294950912  ;;  %v33_v0 = vld [vmem:[#allocation2] sm:$0xff]  ;;  %v34_v2 = vld [vmem:[#allocation2 + $0x8] sm:$0xff] }
  0x13   :  { %v37_v1 = vld [vmem:[#allocation2 + $0x20] sm:$0xff]  ;;  %v38_v4 = vld [vmem:[#allocation2 + $0x28] sm:$0xff] }
  0x14   :  { %v1788_v3 = vcombine.high %v33_v0, %v37_v1  ;;  %v1787_v5 = vcombine.low %v33_v0, %v37_v1  ;;  %v41_v6 = vld [vmem:[#allocation2 + $0x40] sm:$0xff]  ;;  %v1790_v8 = vcombine.high %v34_v2, %v38_v4  ;;  %v1789_v9 = vcombine.low %v34_v2, %v38_v4  ;;  %v42_v11 = vld [vmem:[#allocation2 + $0x48] sm:$0xff] }
  0x15   :  { %v45_v7 = vld [vmem:[#allocation2 + $0x60] sm:$0xff]  ;;  %v46_v12 = vld [vmem:[#allocation2 + $0x68] sm:$0xff] }
  0x16   :  { %v1796_v10 = vcombine.high %v41_v6, %v45_v7  ;;  %v49_v13 = vld [vmem:[#allocation2 + $0x80] sm:$0xff]  ;;  %811 = vmatprep.subr.bf16.mxu0 %v1788_v3  ;;  %v1798_v14 = vcombine.high %v42_v11, %v46_v12  ;;  %v50_v16 = vld [vmem:[#allocation2 + $0x88] sm:$0xff]  ;;  %854 = vmatprep.subr.bf16.mxu1 %v1790_v8  ;;  %v1795_v18 = vcombine.low %v41_v6, %v45_v7 }
  0x17   :  { %v53_v15 = vld [vmem:[#allocation2 + $0xa0] sm:$0xff]  ;;  %v54_v17 = vld [vmem:[#allocation2 + $0xa8] sm:$0xff]  ;;  %812 = vmatpush1.bf16.msra.mxu0 %v1787_v5  ;;  %855 = vmatpush1.bf16.msra.mxu1 %v1789_v9  ;;  %v1797_v19 = vcombine.low %v42_v11, %v46_v12 }
  0x18   :  { %813 = vmatprep.subr.bf16.mxu0 %v1796_v10  ;;  %v1804_v20 = vcombine.high %v49_v13, %v53_v15  ;;  %856 = vmatprep.subr.bf16.mxu1 %v1798_v14  ;;  %v1806_v21 = vcombine.high %v50_v16, %v54_v17  ;;  %v57_v22 = vld [vmem:[#allocation2 + $0xc0] sm:$0xff]  ;;  %v58_v24 = vld [vmem:[#allocation2 + $0xc8] sm:$0xff]  ;;  %v1803_v26 = vcombine.low %v49_v13, %v53_v15 }
  0x19   :  { %v61_v23 = vld [vmem:[#allocation2 + $0xe0] sm:$0xff]  ;;  %v62_v25 = vld [vmem:[#allocation2 + $0xe8] sm:$0xff]  ;;  %v1805_v27 = vcombine.low %v50_v16, %v54_v17 }
  0x1a   :  { %v1812_v28 = vcombine.high %v57_v22, %v61_v23  ;;  %v1814_v29 = vcombine.high %v58_v24, %v62_v25  ;;  %v65_v30 = vld [vmem:[#allocation2 + $0x100] sm:$0xff]  ;;  %v66_v32 = vld [vmem:[#allocation2 + $0x108] sm:$0xff]  ;;  %v1811_v34 = vcombine.low %v57_v22, %v61_v23  ;;  %v1813_v35 = vcombine.low %v58_v24, %v62_v25 }
  0x1b   :  { %814 = vmatpush1.bf16.msra.mxu0 %v1795_v18  ;;  %857 = vmatpush1.bf16.msra.mxu1 %v1797_v19  ;;  %v69_v31 = vld [vmem:[#allocation2 + $0x120] sm:$0xff]  ;;  %v70_v33 = vld [vmem:[#allocation2 + $0x128] sm:$0xff] }
  0x1c   :  { %815 = vmatprep.subr.bf16.mxu0 %v1804_v20  ;;  %858 = vmatprep.subr.bf16.mxu1 %v1806_v21  ;;  %v1820_v36 = vcombine.high %v65_v30, %v69_v31  ;;  %v1822_v37 = vcombine.high %v66_v32, %v70_v33  ;;  %v73_v38 = vld [vmem:[#allocation2 + $0x140] sm:$0xff]  ;;  %v74_v40 = vld [vmem:[#allocation2 + $0x148] sm:$0xff]  ;;  %v1819_v42 = vcombine.low %v65_v30, %v69_v31 }
  0x1d   :  { %v77_v39 = vld [vmem:[#allocation2 + $0x160] sm:$0xff]  ;;  %v78_v41 = vld [vmem:[#allocation2 + $0x168] sm:$0xff]  ;;  %v1821_v43 = vcombine.low %v66_v32, %v70_v33 }
  0x1e   :  { %v1828_v44 = vcombine.high %v73_v38, %v77_v39  ;;  %v1830_v45 = vcombine.high %v74_v40, %v78_v41  ;;  %v81_v46 = vld [vmem:[#allocation2 + $0x180] sm:$0xff]  ;;  %v82_v48 = vld [vmem:[#allocation2 + $0x188] sm:$0xff]  ;;  %v1827_v50 = vcombine.low %v73_v38, %v77_v39  ;;  %v1829_v51 = vcombine.low %v74_v40, %v78_v41 }
  0x1f   :  { %816 = vmatpush1.bf16.msra.mxu0 %v1803_v26  ;;  %859 = vmatpush1.bf16.msra.mxu1 %v1805_v27  ;;  %v85_v47 = vld [vmem:[#allocation2 + $0x1a0] sm:$0xff]  ;;  %v86_v49 = vld [vmem:[#allocation2 + $0x1a8] sm:$0xff] }
  0x20   :  { %817 = vmatprep.subr.bf16.mxu0 %v1812_v28  ;;  %860 = vmatprep.subr.bf16.mxu1 %v1814_v29  ;;  %v1836_v52 = vcombine.high %v81_v46, %v85_v47  ;;  %v1838_v53 = vcombine.high %v82_v48, %v86_v49  ;;  %v89_v54 = vld [vmem:[#allocation2 + $0x1c0] sm:$0xff]  ;;  %v90_v57 = vld [vmem:[#allocation2 + $0x1c8] sm:$0xff]  ;;  %v1835_v59 = vcombine.low %v81_v46, %v85_v47 }
  0x21   :  { %v93_v55 = vld [vmem:[#allocation2 + $0x1e0] sm:$0xff]  ;;  %v94_v58 = vld [vmem:[#allocation2 + $0x1e8] sm:$0xff]  ;;  %v1837_v60 = vcombine.low %v82_v48, %v86_v49 }
  0x22   :  { %v2238_v56 = vld [vmem:[%s2513_s0 + $0x4] ss:$8 sps:$4 sm:$0xff]   ;;  %v1844_v61 = vcombine.high %v89_v54, %v93_v55  ;;  %v1846_v62 = vcombine.high %v90_v57, %v94_v58  ;;  %v1843_v3 = vcombine.low %v89_v54, %v93_v55  ;;  %v1845_v4 = vcombine.low %v90_v57, %v94_v58 }
  0x23   :  { %818 = vmatpush1.bf16.msra.mxu0 %v1811_v34  ;;  %861 = vmatpush1.bf16.msra.mxu1 %v1813_v35  ;;  %v97_v63 = vld [vmem:[#allocation2 + $0x200] sm:$0xff]  ;;  %v98_v1 = vld [vmem:[#allocation2 + $0x208] sm:$0xff] }
  0x24   :  { %819 = vmatprep.subr.bf16.mxu0 %v1820_v36  ;;  %862 = vmatprep.subr.bf16.mxu1 %v1822_v37  ;;  %v101_v0 = vld [vmem:[#allocation2 + $0x220] sm:$0xff]  ;;  %v102_v2 = vld [vmem:[#allocation2 + $0x228] sm:$0xff] }
  0x25   :  { %843 = vmatprep.mubr.bf16.mxu0 %v2238_v56  ;;  %886 = vmatprep.mubr.bf16.mxu1 %v2238_v56  ;;  %v1852_v5 = vcombine.high %v97_v63, %v101_v0  ;;  %v1854_v6 = vcombine.high %v98_v1, %v102_v2  ;;  %v105_v7 = vld [vmem:[#allocation2 + $0x240] sm:$0xff]  ;;  %v106_v9 = vld [vmem:[#allocation2 + $0x248] sm:$0xff]  ;;  %v1851_v11 = vcombine.low %v97_v63, %v101_v0  ;;  %v39_v0 = vld [vmem:[#allocation2 + $0x30] sm:$0xff] }
  0x26   :  { %v109_v8 = vld [vmem:[#allocation2 + $0x260] sm:$0xff]  ;;  %v110_v10 = vld [vmem:[#allocation2 + $0x268] sm:$0xff]  ;;  %v1853_v12 = vcombine.low %v98_v1, %v102_v2  ;;  %v36_v2 = vld [vmem:[#allocation2 + $0x18] sm:$0xff] }
  0x27   :  { %820 = vmatpush1.bf16.msra.mxu0 %v1819_v42  ;;  %863 = vmatpush1.bf16.msra.mxu1 %v1821_v43  ;;  %v1860_v13 = vcombine.high %v105_v7, %v109_v8  ;;  %v1862_v14 = vcombine.high %v106_v9, %v110_v10  ;;  %v113_v15 = vld [vmem:[#allocation2 + $0x280] sm:$0xff]  ;;  %v114_v17 = vld [vmem:[#allocation2 + $0x288] sm:$0xff]  ;;  %v1859_v19 = vcombine.low %v105_v7, %v109_v8 }
  0x28   :  { %821 = vmatprep.subr.bf16.mxu0 %v1828_v44  ;;  %864 = vmatprep.subr.bf16.mxu1 %v1830_v45  ;;  %v117_v16 = vld [vmem:[#allocation2 + $0x2a0] sm:$0xff]  ;;  %v118_v18 = vld [vmem:[#allocation2 + $0x2a8] sm:$0xff]  ;;  %v1861_v20 = vcombine.low %v106_v9, %v110_v10  ;;  %v47_v9 = vld [vmem:[#allocation2 + $0x70] sm:$0xff] }
  0x29   :  { %v1868_v21 = vcombine.high %v113_v15, %v117_v16  ;;  %v1870_v22 = vcombine.high %v114_v17, %v118_v18  ;;  %v121_v23 = vld [vmem:[#allocation2 + $0x2c0] sm:$0xff]  ;;  %v122_v25 = vld [vmem:[#allocation2 + $0x2c8] sm:$0xff]  ;;  %v1867_v27 = vcombine.low %v113_v15, %v117_v16  ;;  %v1869_v28 = vcombine.low %v114_v17, %v118_v18  ;;  %v55_v17 = vld [vmem:[#allocation2 + $0xb0] sm:$0xff] }
  0x2a   :  { %v125_v24 = vld [vmem:[#allocation2 + $0x2e0] sm:$0xff]  ;;  %v126_v26 = vld [vmem:[#allocation2 + $0x2e8] sm:$0xff] }
  0x2b   :  { %822 = vmatpush1.bf16.msra.mxu0 %v1827_v50  ;;  %865 = vmatpush1.bf16.msra.mxu1 %v1829_v51  ;;  %v1876_v29 = vcombine.high %v121_v23, %v125_v24  ;;  %v1878_v30 = vcombine.high %v122_v25, %v126_v26  ;;  %v129_v31 = vld [vmem:[#allocation2 + $0x300] sm:$0xff]  ;;  %v130_v33 = vld [vmem:[#allocation2 + $0x308] sm:$0xff]  ;;  %v1875_v35 = vcombine.low %v121_v23, %v125_v24  ;;  %v63_v23 = vld [vmem:[#allocation2 + $0xf0] sm:$0xff] }
  0x2c   :  { %823 = vmatprep.subr.bf16.mxu0 %v1836_v52  ;;  %866 = vmatprep.subr.bf16.mxu1 %v1838_v53  ;;  %v133_v32 = vld [vmem:[#allocation2 + $0x320] sm:$0xff]  ;;  %v134_v34 = vld [vmem:[#allocation2 + $0x328] sm:$0xff]  ;;  %v1877_v37 = vcombine.low %v122_v25, %v126_v26  ;;  %v60_v26 = vld [vmem:[#allocation2 + $0xd8] sm:$0xff] }
  0x2d   :  { %v137_v36 = vld [vmem:[#allocation2 + $0x340] sm:$0xff]  ;;  %v1884_v38 = vcombine.high %v129_v31, %v133_v32  ;;  %v1886_v40 = vcombine.high %v130_v33, %v134_v34  ;;  %v138_v41 = vld [vmem:[#allocation2 + $0x348] sm:$0xff]  ;;  %v1883_v43 = vcombine.low %v129_v31, %v133_v32  ;;  %v1885_v45 = vcombine.low %v130_v33, %v134_v34  ;;  %v71_v31 = vld [vmem:[#allocation2 + $0x130] sm:$0xff] }
  0x2e   :  { %v141_v39 = vld [vmem:[#allocation2 + $0x360] sm:$0xff]  ;;  %v142_v42 = vld [vmem:[#allocation2 + $0x368] sm:$0xff]  ;;  %v68_v34 = vld [vmem:[#allocation2 + $0x118] sm:$0xff] }
  0x2f   :  { %824 = vmatpush1.bf16.msra.mxu0 %v1835_v59  ;;  %867 = vmatpush1.bf16.msra.mxu1 %v1837_v60  ;;  %v145_v44 = vld [vmem:[#allocation2 + $0x380] sm:$0xff]  ;;  %v1892_v46 = vcombine.high %v137_v36, %v141_v39  ;;  %v1894_v48 = vcombine.high %v138_v41, %v142_v42  ;;  %v146_v49 = vld [vmem:[#allocation2 + $0x388] sm:$0xff]  ;;  %v1891_v51 = vcombine.low %v137_v36, %v141_v39  ;;  %v79_v39 = vld [vmem:[#allocation2 + $0x170] sm:$0xff] }
  0x30   :  { %825 = vmatprep.subr.bf16.mxu0 %v1844_v61  ;;  %868 = vmatprep.subr.bf16.mxu1 %v1846_v62  ;;  %v149_v47 = vld [vmem:[#allocation2 + $0x3a0] sm:$0xff]  ;;  %v150_v50 = vld [vmem:[#allocation2 + $0x3a8] sm:$0xff]  ;;  %v1893_v53 = vcombine.low %v138_v41, %v142_v42  ;;  %v35_v61 = vld [vmem:[#allocation2 + $0x10] sm:$0xff] }
  0x31   :  { %v153_v52 = vld [vmem:[#allocation2 + $0x3c0] sm:$0xff]  ;;  %v1900_v54 = vcombine.high %v145_v44, %v149_v47  ;;  %v1902_v57 = vcombine.high %v146_v49, %v150_v50  ;;  %v154_v58 = vld [vmem:[#allocation2 + $0x3c8] sm:$0xff]  ;;  %v1899_v60 = vcombine.low %v145_v44, %v149_v47  ;;  %v1901_v62 = vcombine.low %v146_v49, %v150_v50  ;;  %v76_v41 = vld [vmem:[#allocation2 + $0x158] sm:$0xff] }
  0x32   :  { %v157_v55 = vld [vmem:[#allocation2 + $0x3e0] sm:$0xff]  ;;  %v158_v59 = vld [vmem:[#allocation2 + $0x3e8] sm:$0xff]  ;;  %v1792_v8 = vcombine.high %v35_v61, %v39_v0  ;;  %v80_v42 = vld [vmem:[#allocation2 + $0x178] sm:$0xff] }
  0x33   :  { %826 = vmatpush1.bf16.msra.mxu0 %v1843_v3  ;;  %869 = vmatpush1.bf16.msra.mxu1 %v1845_v4  ;;  %v1908_v63 = vcombine.high %v153_v52, %v157_v55  ;;  %v1910_v1 = vcombine.high %v154_v58, %v158_v59  ;;  %v40_v3 = vld [vmem:[#allocation2 + $0x38] sm:$0xff]  ;;  %v1907_v4 = vcombine.low %v153_v52, %v157_v55  ;;  %v2245_v7 = vld [vmem:[%s2513_s0] ss:$8 sps:$4 sm:$0xff]  }
  0x34   :  { %827 = vmatprep.subr.bf16.mxu0 %v1852_v5  ;;  %870 = vmatprep.subr.bf16.mxu1 %v1854_v6  ;;  %v43_v5 = vld [vmem:[#allocation2 + $0x50] sm:$0xff]  ;;  %v1909_v6 = vcombine.low %v154_v58, %v158_v59  ;;  %v1794_v10 = vcombine.high %v36_v2, %v40_v3  ;;  %v1793_v15 = vcombine.low %v36_v2, %v40_v3  ;;  %v84_v49 = vld [vmem:[#allocation2 + $0x198] sm:$0xff] }
  0x35   :  { %v1800_v16 = vcombine.high %v43_v5, %v47_v9  ;;  %v88_v50 = vld [vmem:[#allocation2 + $0x1b8] sm:$0xff]  ;;  %v1833_v55 = vcombine.low %v76_v41, %v80_v42 }
  0x36   :  { %v92_v58 = vld [vmem:[#allocation2 + $0x1d8] sm:$0xff] }
  0x37   :  { %828 = vmatpush1.bf16.msra.mxu0 %v1851_v11  ;;  %871 = vmatpush1.bf16.msra.mxu1 %v1853_v12  ;;  %v44_v11 = vld [vmem:[#allocation2 + $0x58] sm:$0xff] }
  0x38   :  { %829 = vmatprep.subr.bf16.mxu0 %v1860_v13  ;;  %872 = vmatprep.subr.bf16.mxu1 %v1862_v14  ;;  %v48_v12 = vld [vmem:[#allocation2 + $0x78] sm:$0xff]  ;;  %v1791_v13 = vcombine.low %v35_v61, %v39_v0  ;;  %v51_v14 = vld [vmem:[#allocation2 + $0x90] sm:$0xff]  ;;  %v1841_v0 = vcombine.low %v84_v49, %v88_v50 }
  0x39   :  { %v1802_v18 = vcombine.high %v44_v11, %v48_v12  ;;  %v1801_v24 = vcombine.low %v44_v11, %v48_v12  ;;  %v1808_v25 = vcombine.high %v51_v14, %v55_v17  ;;  %v96_v59 = vld [vmem:[#allocation2 + $0x1f8] sm:$0xff] }
  0x3a   :  { %v100_v2 = vld [vmem:[#allocation2 + $0x218] sm:$0xff] }
  0x3b   :  { %830 = vmatpush1.bf16.msra.mxu0 %v1859_v19  ;;  %873 = vmatpush1.bf16.msra.mxu1 %v1861_v20  ;;  %v52_v19 = vld [vmem:[#allocation2 + $0x98] sm:$0xff] }
  0x3c   :  { %831 = vmatprep.subr.bf16.mxu0 %v1868_v21  ;;  %874 = vmatprep.subr.bf16.mxu1 %v1870_v22  ;;  %v56_v20 = vld [vmem:[#allocation2 + $0xb8] sm:$0xff]  ;;  %v1799_v21 = vcombine.low %v43_v5, %v47_v9  ;;  %v59_v22 = vld [vmem:[#allocation2 + $0xd0] sm:$0xff]  ;;  %v1849_v9 = vcombine.low %v92_v58, %v96_v59 }
  0x3d   :  { %v1809_v32 = vcombine.low %v52_v19, %v56_v20  ;;  %v1816_v33 = vcombine.high %v59_v22, %v63_v23  ;;  %v104_v3 = vld [vmem:[#allocation2 + $0x238] sm:$0xff] }
  0x3e   :  { %v1858_v11 = vcombine.high %v100_v2, %v104_v3  ;;  %v108_v12 = vld [vmem:[#allocation2 + $0x258] sm:$0xff] }
  0x3f   :  { %832 = vmatpush1.bf16.msra.mxu0 %v1867_v27  ;;  %875 = vmatpush1.bf16.msra.mxu1 %v1869_v28  ;;  %v64_v27 = vld [vmem:[#allocation2 + $0xf8] sm:$0xff]  ;;  %v1810_v28 = vcombine.high %v52_v19, %v56_v20  ;;  %v119_v19 = vld [vmem:[#allocation2 + $0x2b0] sm:$0xff] }
  0x40   :  { %833 = vmatprep.subr.bf16.mxu0 %v1876_v29  ;;  %876 = vmatprep.subr.bf16.mxu1 %v1878_v30  ;;  %v1807_v29 = vcombine.low %v51_v14, %v55_v17  ;;  %v67_v30 = vld [vmem:[#allocation2 + $0x110] sm:$0xff]  ;;  %v1818_v36 = vcombine.high %v60_v26, %v64_v27  ;;  %v116_v20 = vld [vmem:[#allocation2 + $0x298] sm:$0xff] }
  0x41   :  { %v1823_v44 = vcombine.low %v67_v30, %v71_v31 }
  0x43   :  { %834 = vmatpush1.bf16.msra.mxu0 %v1875_v35  ;;  %877 = vmatpush1.bf16.msra.mxu1 %v1877_v37  ;;  %v72_v35 = vld [vmem:[#allocation2 + $0x138] sm:$0xff]  ;;  %v1815_v37 = vcombine.low %v59_v22, %v63_v23 }
  0x44   :  { %835 = vmatprep.subr.bf16.mxu0 %v1884_v38  ;;  %878 = vmatprep.subr.bf16.mxu1 %v1886_v40  ;;  %v75_v38 = vld [vmem:[#allocation2 + $0x150] sm:$0xff]  ;;  %v1817_v40 = vcombine.low %v60_v26, %v64_v27  ;;  %v1825_v47 = vcombine.low %v68_v34, %v72_v35 }
  0x45   :  { %v1831_v52 = vcombine.low %v75_v38, %v79_v39  ;;  %v123_v26 = vld [vmem:[#allocation2 + $0x2d0] sm:$0xff] }
  0x46   :  { %v127_v27 = vld [vmem:[#allocation2 + $0x2f0] sm:$0xff] }
  0x47   :  { %836 = vmatpush1.bf16.msra.mxu0 %v1883_v43  ;;  %879 = vmatpush1.bf16.msra.mxu1 %v1885_v45  ;;  %v1826_v43 = vcombine.high %v68_v34, %v72_v35  ;;  %v83_v45 = vld [vmem:[#allocation2 + $0x190] sm:$0xff] }
  0x48   :  { %837 = vmatprep.subr.bf16.mxu0 %v1892_v46  ;;  %880 = vmatprep.subr.bf16.mxu1 %v1894_v48  ;;  %v87_v46 = vld [vmem:[#allocation2 + $0x1b0] sm:$0xff]  ;;  %v1832_v48 = vcombine.high %v75_v38, %v79_v39  ;;  %v1879_v38 = vcombine.low %v123_v26, %v127_v27 }
  0x49   :  { %v1839_v61 = vcombine.low %v83_v45, %v87_v46  ;;  %v131_v34 = vld [vmem:[#allocation2 + $0x310] sm:$0xff] }
  0x4a   :  { %v135_v35 = vld [vmem:[#allocation2 + $0x330] sm:$0xff] }
  0x4b   :  { %838 = vmatpush1.bf16.msra.mxu0 %v1891_v51  ;;  %881 = vmatpush1.bf16.msra.mxu1 %v1893_v53  ;;  %v1834_v51 = vcombine.high %v76_v41, %v80_v42  ;;  %v91_v53 = vld [vmem:[#allocation2 + $0x1d0] sm:$0xff] }
  0x4c   :  { %839 = vmatprep.subr.bf16.mxu0 %v1900_v54  ;;  %882 = vmatprep.subr.bf16.mxu1 %v1902_v57  ;;  %v95_v54 = vld [vmem:[#allocation2 + $0x1f0] sm:$0xff]  ;;  %v1840_v57 = vcombine.high %v83_v45, %v87_v46  ;;  %v1887_v45 = vcombine.low %v131_v34, %v135_v35 }
  0x4d   :  { %v1847_v5 = vcombine.low %v91_v53, %v95_v54  ;;  %v139_v41 = vld [vmem:[#allocation2 + $0x350] sm:$0xff] }
  0x4e   :  { %v143_v42 = vld [vmem:[#allocation2 + $0x370] sm:$0xff] }
  0x4f   :  { %840 = vmatpush1.bf16.msra.mxu0 %v1899_v60  ;;  %883 = vmatpush1.bf16.msra.mxu1 %v1901_v62  ;;  %v1842_v60 = vcombine.high %v84_v49, %v88_v50  ;;  %v99_v62 = vld [vmem:[#allocation2 + $0x210] sm:$0xff] }
  0x50   :  { %841 = vmatprep.subr.bf16.mxu0 %v1908_v63  ;;  %884 = vmatprep.subr.bf16.mxu1 %v1910_v1  ;;  %v103_v63 = vld [vmem:[#allocation2 + $0x230] sm:$0xff]  ;;  %v1848_v1 = vcombine.high %v91_v53, %v95_v54  ;;  %v1895_v53 = vcombine.low %v139_v41, %v143_v42 }
  0x51   :  { %v1855_v14 = vcombine.low %v99_v62, %v103_v63  ;;  %v147_v49 = vld [vmem:[#allocation2 + $0x390] sm:$0xff] }
  0x52   :  { %v151_v50 = vld [vmem:[#allocation2 + $0x3b0] sm:$0xff] }
  0x53   :  { %842 = vmatpush1.bf16.msra.mxu0 %v1907_v4  ;;  %885 = vmatpush1.bf16.msra.mxu1 %v1909_v6  ;;  %v1850_v4 = vcombine.high %v92_v58, %v96_v59  ;;  %v107_v6 = vld [vmem:[#allocation2 + $0x250] sm:$0xff] }
  0x54   :  { %897 = vmatprep.subr.bf16.mxu0 %v1792_v8  ;;  %940 = vmatprep.subr.bf16.mxu1 %v1794_v10  ;;  %v111_v8 = vld [vmem:[#allocation2 + $0x270] sm:$0xff]  ;;  %v1856_v10 = vcombine.high %v99_v62, %v103_v63  ;;  %v1903_v62 = vcombine.low %v147_v49, %v151_v50 }
  0x55   :  { %v1863_v22 = vcombine.low %v107_v6, %v111_v8  ;;  %v155_v58 = vld [vmem:[#allocation2 + $0x3d0] sm:$0xff] }
  0x56   :  { %844 = vmatmul.mubr.bf16.vlgmr.msra.gmra.mrb[0].mxu0 %v2245_v7  ;;  %887 = vmatmul.mubr.bf16.vlgmr.msra.gmra.mrb[0].mxu1 %v2245_v7  ;;  %v159_v59 = vld [vmem:[#allocation2 + $0x3f0] sm:$0xff] }
  0x57   :  { %898 = vmatpush1.bf16.msra.mxu0 %v1791_v13  ;;  %941 = vmatpush1.bf16.msra.mxu1 %v1793_v15  ;;  %v112_v13 = vld [vmem:[#allocation2 + $0x278] sm:$0xff]  ;;  %v1857_v15 = vcombine.low %v100_v2, %v104_v3  ;;  %v1911_v2 = vcombine.low %v155_v58, %v159_v59 }
  0x58   :  { %899 = vmatprep.subr.bf16.mxu0 %v1800_v16  ;;  %942 = vmatprep.subr.bf16.mxu1 %v1802_v18  ;;  %v1864_v16 = vcombine.high %v107_v6, %v111_v8  ;;  %v1866_v17 = vcombine.high %v108_v12, %v112_v13  ;;  %v115_v18 = vld [vmem:[#allocation2 + $0x290] sm:$0xff]  ;;  %v1865_v23 = vcombine.low %v108_v12, %v112_v13  ;;  %v2108_v6 = vld [vmem:[%s2515_s2] sm:$0xff]   ;;  %v2113_v12 = vld [vmem:[%s2515_s2 + $0x88] sm:$0xff]  }
  0x59   :  { %929 = vmatprep.mubr.bf16.mxu0 %v2238_v56  ;;  %972 = vmatprep.mubr.bf16.mxu1 %v2238_v56  ;;  %v1824_v56 = vcombine.high %v67_v30, %v71_v31  ;;  %v1871_v30 = vcombine.low %v115_v18, %v119_v19  ;;  %v2109_v8 = vld [vmem:[%s2515_s2 + $0x80] sm:$0xff]   ;;  %v2114_v13 = vld [vmem:[%s2515_s2 + $0x50] sm:$0xff]  }
  0x5b   :  { %900 = vmatpush1.bf16.msra.mxu0 %v1799_v21  ;;  %943 = vmatpush1.bf16.msra.mxu1 %v1801_v24  ;;  %v120_v21 = vld [vmem:[#allocation2 + $0x2b8] sm:$0xff]  ;;  %v1872_v24 = vcombine.high %v115_v18, %v119_v19 }
  0x5c   :  { %901 = vmatprep.subr.bf16.mxu0 %v1808_v25  ;;  %944 = vmatprep.subr.bf16.mxu1 %v1810_v28  ;;  %v1874_v25 = vcombine.high %v116_v20, %v120_v21  ;;  %v124_v28 = vld [vmem:[#allocation2 + $0x2d8] sm:$0xff]  ;;  %v1873_v31 = vcombine.low %v116_v20, %v120_v21  ;;  %v2122_v20 = vld [vmem:[%s2515_s2 + $0x60] sm:$0xff]  }
  0x5d   :  { %v2120_v18 = vld [vmem:[%s2515_s2 + $0x18] sm:$0xff]   ;;  %v2123_v21 = vld [vmem:[%s2515_s2 + $0xe0] sm:$0xff]  }
  0x5e   :  { %v2121_v19 = vld [vmem:[%s2515_s2 + $0x98] sm:$0xff]  }
  0x5f   :  { %902 = vmatpush1.bf16.msra.mxu0 %v1807_v29  ;;  %945 = vmatpush1.bf16.msra.mxu1 %v1809_v32  ;;  %v128_v29 = vld [vmem:[#allocation2 + $0x2f8] sm:$0xff]  ;;  %v1880_v32 = vcombine.high %v123_v26, %v127_v27  ;;  %v2128_v26 = vld [vmem:[%s2515_s2 + $0x28] sm:$0xff]  }
  0x60   :  { %903 = vmatprep.subr.bf16.mxu0 %v1816_v33  ;;  %946 = vmatprep.subr.bf16.mxu1 %v1818_v36  ;;  %v1882_v33 = vcombine.high %v124_v28, %v128_v29  ;;  %v132_v36 = vld [vmem:[#allocation2 + $0x318] sm:$0xff]  ;;  %v1881_v39 = vcombine.low %v124_v28, %v128_v29  ;;  %v2129_v27 = vld [vmem:[%s2515_s2 + $0xa8] sm:$0xff]   ;;  %v2130_v28 = vld [vmem:[%s2515_s2 + $0x70] sm:$0xff]  }
  0x61   :  { %v2131_v29 = vld [vmem:[%s2515_s2 + $0xf0] sm:$0xff]  }
  0x63   :  { %904 = vmatpush1.bf16.msra.mxu0 %v1815_v37  ;;  %947 = vmatpush1.bf16.msra.mxu1 %v1817_v40  ;;  %v136_v37 = vld [vmem:[#allocation2 + $0x338] sm:$0xff]  ;;  %v1888_v40 = vcombine.high %v131_v34, %v135_v35 }
  0x64   :  { %905 = vmatprep.subr.bf16.mxu0 %v1824_v56  ;;  %948 = vmatprep.subr.bf16.mxu1 %v1826_v43  ;;  %v1890_v56 = vcombine.high %v132_v36, %v136_v37  ;;  %v140_v43 = vld [vmem:[#allocation2 + $0x358] sm:$0xff]  ;;  %v1889_v46 = vcombine.low %v132_v36, %v136_v37  ;;  %v2138_v36 = vld [vmem:[%s2515_s2 + $0x140] sm:$0xff]  }
  0x65   :  { %v2136_v34 = vld [vmem:[%s2515_s2 + $0x38] sm:$0xff]   ;;  %v2139_v37 = vld [vmem:[%s2515_s2 + $0x1c0] sm:$0xff]  }
  0x66   :  { %v2137_v35 = vld [vmem:[%s2515_s2 + $0xb8] sm:$0xff]  }
  0x67   :  { %906 = vmatpush1.bf16.msra.mxu0 %v1823_v44  ;;  %949 = vmatpush1.bf16.msra.mxu1 %v1825_v47  ;;  %v144_v44 = vld [vmem:[#allocation2 + $0x378] sm:$0xff]  ;;  %v1896_v47 = vcombine.high %v139_v41, %v143_v42 }
  0x68   :  { %907 = vmatprep.subr.bf16.mxu0 %v1832_v48  ;;  %950 = vmatprep.subr.bf16.mxu1 %v1834_v51  ;;  %v1898_v48 = vcombine.high %v140_v43, %v144_v44  ;;  %v148_v51 = vld [vmem:[#allocation2 + $0x398] sm:$0xff]  ;;  %v1897_v54 = vcombine.low %v140_v43, %v144_v44 }
  0x6b   :  { %908 = vmatpush1.bf16.msra.mxu0 %v1831_v52  ;;  %951 = vmatpush1.bf16.msra.mxu1 %v1833_v55  ;;  %v152_v52 = vld [vmem:[#allocation2 + $0x3b8] sm:$0xff]  ;;  %v1904_v55 = vcombine.high %v147_v49, %v151_v50  ;;  %v2142_v49 = vld [vmem:[%s2515_s2 + $0x148] sm:$0xff]  }
  0x6c   :  { %909 = vmatprep.subr.bf16.mxu0 %v1840_v57  ;;  %952 = vmatprep.subr.bf16.mxu1 %v1842_v60  ;;  %v1906_v57 = vcombine.high %v148_v51, %v152_v52  ;;  %v156_v60 = vld [vmem:[#allocation2 + $0x3d8] sm:$0xff]  ;;  %v1905_v63 = vcombine.low %v148_v51, %v152_v52  ;;  %v2143_v50 = vld [vmem:[%s2515_s2 + $0x1c8] sm:$0xff]  }
  0x6d   :  { %v2144_v51 = vld [vmem:[%s2515_s2 + $0x108] sm:$0xff]  }
  0x6e   :  { %v2145_v52 = vld [vmem:[%s2515_s2 + $0x188] sm:$0xff]  }
  0x6f   :  { %910 = vmatpush1.bf16.msra.mxu0 %v1839_v61  ;;  %953 = vmatpush1.bf16.msra.mxu1 %v1841_v0  ;;  %v160_v61 = vld [vmem:[#allocation2 + $0x3f8] sm:$0xff]  ;;  %v1912_v0 = vcombine.high %v155_v58, %v159_v59 }
  0x70   :  { %911 = vmatprep.subr.bf16.mxu0 %v1848_v1  ;;  %954 = vmatprep.subr.bf16.mxu1 %v1850_v4  ;;  %v1914_v1 = vcombine.high %v156_v60, %v160_v61  ;;  %v1913_v3 = vcombine.low %v156_v60, %v160_v61  ;;  %v2106_v4 = vld [vmem:[%s2515_s2 + $0x40] sm:$0xff]   ;;  %v2150_v58 = vld [vmem:[%s2515_s2 + $0x158] sm:$0xff]  }
  0x71   :  { %v2151_v59 = vld [vmem:[%s2515_s2 + $0x1d8] sm:$0xff]  }
  0x72   :  { %v2152_v60 = vld [vmem:[%s2515_s2 + $0x118] sm:$0xff]  }
  0x73   :  { %912 = vmatpush1.bf16.msra.mxu0 %v1847_v5  ;;  %955 = vmatpush1.bf16.msra.mxu1 %v1849_v9  ;;  %v2107_v5 = vld [vmem:[%s2515_s2 + $0xc0] sm:$0xff]   ;;  %v2110_v9 = vld [vmem:[%s2515_s2 + $0x48] sm:$0xff]   ;;  %v2153_v61 = vld [vmem:[%s2515_s2 + $0x198] sm:$0xff]  }
  0x74   :  { %913 = vmatprep.subr.bf16.mxu0 %v1856_v10  ;;  %956 = vmatprep.subr.bf16.mxu1 %v1858_v11  ;;  %v2111_v10 = vld [vmem:[%s2515_s2 + $0xc8] sm:$0xff]  }
  0x75   :  { %v2112_v11 = vld [vmem:[%s2515_s2 + $0x8] sm:$0xff]  }
  0x77   :  { %914 = vmatpush1.bf16.msra.mxu0 %v1855_v14  ;;  %957 = vmatpush1.bf16.msra.mxu1 %v1857_v15  ;;  %v2116_v14 = vld [vmem:[%s2515_s2 + $0x10] sm:$0xff]  }
  0x78   :  { %915 = vmatprep.subr.bf16.mxu0 %v1864_v16  ;;  %958 = vmatprep.subr.bf16.mxu1 %v1866_v17  ;;  %v2117_v15 = vld [vmem:[%s2515_s2 + $0x90] sm:$0xff]   ;;  %v2118_v16 = vld [vmem:[%s2515_s2 + $0x58] sm:$0xff]  }
  0x79   :  { %v2119_v17 = vld [vmem:[%s2515_s2 + $0xd8] sm:$0xff]  }
  0x7b   :  { %916 = vmatpush1.bf16.msra.mxu0 %v1863_v22  ;;  %959 = vmatpush1.bf16.msra.mxu1 %v1865_v23  ;;  %v2124_v22 = vld [vmem:[%s2515_s2 + $0x20] sm:$0xff]  }
  0x7c   :  { %917 = vmatprep.subr.bf16.mxu0 %v1872_v24  ;;  %960 = vmatprep.subr.bf16.mxu1 %v1874_v25  ;;  %v2125_v23 = vld [vmem:[%s2515_s2 + $0xa0] sm:$0xff]   ;;  %v2126_v24 = vld [vmem:[%s2515_s2 + $0x68] sm:$0xff]  }
  0x7d   :  { %v2127_v25 = vld [vmem:[%s2515_s2 + $0xe8] sm:$0xff]  }
  0x7f   :  { %918 = vmatpush1.bf16.msra.mxu0 %v1871_v30  ;;  %961 = vmatpush1.bf16.msra.mxu1 %v1873_v31  ;;  %v2132_v30 = vld [vmem:[%s2515_s2 + $0x30] sm:$0xff]  }
  0x80   :  { %919 = vmatprep.subr.bf16.mxu0 %v1880_v32  ;;  %962 = vmatprep.subr.bf16.mxu1 %v1882_v33  ;;  %v2133_v31 = vld [vmem:[%s2515_s2 + $0xb0] sm:$0xff]   ;;  %v2134_v32 = vld [vmem:[%s2515_s2 + $0x78] sm:$0xff]  }
  0x81   :  { %v2135_v33 = vld [vmem:[%s2515_s2 + $0xf8] sm:$0xff]  }
  0x83   :  { %920 = vmatpush1.bf16.msra.mxu0 %v1879_v38  ;;  %963 = vmatpush1.bf16.msra.mxu1 %v1881_v39 }
  0x84   :  { %921 = vmatprep.subr.bf16.mxu0 %v1888_v40  ;;  %964 = vmatprep.subr.bf16.mxu1 %v1890_v56 }
  0x87   :  { %922 = vmatpush1.bf16.msra.mxu0 %v1887_v45  ;;  %965 = vmatpush1.bf16.msra.mxu1 %v1889_v46  ;;  %v2140_v46 = vld [vmem:[%s2515_s2 + $0x100] sm:$0xff]  }
  0x88   :  { %923 = vmatprep.subr.bf16.mxu0 %v1896_v47  ;;  %966 = vmatprep.subr.bf16.mxu1 %v1898_v48  ;;  %v2197_v47 = vmov 1.0|1.0   ;;  %v2141_v48 = vld [vmem:[%s2515_s2 + $0x180] sm:$0xff]  }
  0x8b   :  { %924 = vmatpush1.bf16.msra.mxu0 %v1895_v53  ;;  %967 = vmatpush1.bf16.msra.mxu1 %v1897_v54  ;;  %v2146_v53 = vld [vmem:[%s2515_s2 + $0x150] sm:$0xff]  }
  0x8c   :  { %925 = vmatprep.subr.bf16.mxu0 %v1904_v55  ;;  %968 = vmatprep.subr.bf16.mxu1 %v1906_v57  ;;  %v2147_v54 = vld [vmem:[%s2515_s2 + $0x1d0] sm:$0xff]  }
  0x8d   :  { %v2148_v55 = vld [vmem:[%s2515_s2 + $0x110] sm:$0xff]  }
  0x8e   :  { %v2149_v57 = vld [vmem:[%s2515_s2 + $0x190] sm:$0xff]  }
  0x8f   :  { %926 = vmatpush1.bf16.msra.mxu0 %v1903_v62  ;;  %969 = vmatpush1.bf16.msra.mxu1 %v1905_v63  ;;  %v2154_v62 = vld [vmem:[%s2515_s2 + $0x160] sm:$0xff]  }
  0x90   :  { %927 = vmatprep.subr.bf16.mxu0 %v1912_v0  ;;  %970 = vmatprep.subr.bf16.mxu1 %v1914_v1  ;;  %v2155_v63 = vld [vmem:[%s2515_s2 + $0x1e0] sm:$0xff]  }
  0x91   :  { %v2156_v0 = vld [vmem:[%s2515_s2 + $0x120] sm:$0xff]  }
  0x92   :  { %v2157_v1 = vld [vmem:[%s2515_s2 + $0x1a0] sm:$0xff]  }
  0x93   :  { %928 = vmatpush1.bf16.msra.mxu0 %v1911_v2  ;;  %971 = vmatpush1.bf16.msra.mxu1 %v1913_v3  ;;  %v2158_v2 = vld [vmem:[%s2515_s2 + $0x168] sm:$0xff]  }
  0x94   :  { %2011 = vmatprep.subr.bf16.mxu0 %v2106_v4  ;;  %2033 = vmatprep.subr.bf16.mxu1 %v2107_v5  ;;  %v2159_v3 = vld [vmem:[%s2515_s2 + $0x1e8] sm:$0xff]  }
  0x95   :  { %v2160_v4 = vld [vmem:[%s2515_s2 + $0x128] sm:$0xff]  }
  0x96   :  { %930 = vmatmul.mubr.bf16.vlgmr.msra.gmra.mrb[4].mxu0 %v2245_v7  ;;  %973 = vmatmul.mubr.bf16.vlgmr.msra.gmra.mrb[4].mxu1 %v2245_v7  ;;  %v2115_v7 = vld [vmem:[%s2515_s2 + $0xd0] sm:$0xff]   ;;  %v2161_v5 = vld [vmem:[%s2515_s2 + $0x1a8] sm:$0xff]  }
  0x97   :  { %2012 = vmatpush3.bf16.msra.mxu0 %v2108_v6  ;;  %2034 = vmatpush3.bf16.msra.mxu1 %v2109_v8  ;;  %v2162_v6 = vld [vmem:[%s2515_s2 + $0x170] sm:$0xff]  }
  0x98   :  { %2013 = vmatprep.subr.bf16.mxu0 %v2110_v9  ;;  %2035 = vmatprep.subr.bf16.mxu1 %v2111_v10  ;;  %v2163_v8 = vld [vmem:[%s2515_s2 + $0x1f0] sm:$0xff]  }
  0x99   :  { %v2164_v9 = vld [vmem:[%s2515_s2 + $0x130] sm:$0xff]  }
  0x9a   :  { %v2165_v10 = vld [vmem:[%s2515_s2 + $0x1b0] sm:$0xff]  }
  0x9b   :  { %2014 = vmatpush3.bf16.msra.mxu0 %v2112_v11  ;;  %2036 = vmatpush3.bf16.msra.mxu1 %v2113_v12  ;;  %v2166_v11 = vld [vmem:[%s2515_s2 + $0x178] sm:$0xff]  }
  0x9c   :  { %2015 = vmatprep.subr.bf16.mxu0 %v2114_v13  ;;  %2037 = vmatprep.subr.bf16.mxu1 %v2115_v7  ;;  %v2167_v12 = vld [vmem:[%s2515_s2 + $0x1f8] sm:$0xff]  }
  0x9d   :  { %v2168_v13 = vld [vmem:[%s2515_s2 + $0x138] sm:$0xff]  }
  0x9e   :  { %v2169_v7 = vld [vmem:[%s2515_s2 + $0x1b8] sm:$0xff]  }
  0x9f   :  { %2016 = vmatpush3.bf16.msra.mxu0 %v2116_v14  ;;  %2038 = vmatpush3.bf16.msra.mxu1 %v2117_v15 }
  0xa0   :  { %2017 = vmatprep.subr.bf16.mxu0 %v2118_v16  ;;  %2039 = vmatprep.subr.bf16.mxu1 %v2119_v17 }
  0xa3   :  { %2018 = vmatpush3.bf16.msra.mxu0 %v2120_v18  ;;  %2040 = vmatpush3.bf16.msra.mxu1 %v2121_v19 }
  0xa4   :  { %2019 = vmatprep.subr.bf16.mxu0 %v2122_v20  ;;  %2041 = vmatprep.subr.bf16.mxu1 %v2123_v21 }
  0xa7   :  { %2020 = vmatpush3.bf16.msra.mxu0 %v2124_v22  ;;  %2042 = vmatpush3.bf16.msra.mxu1 %v2125_v23 }
  0xa8   :  { %2021 = vmatprep.subr.bf16.mxu0 %v2126_v24  ;;  %2043 = vmatprep.subr.bf16.mxu1 %v2127_v25 }
  0xab   :  { %2022 = vmatpush3.bf16.msra.mxu0 %v2128_v26  ;;  %2044 = vmatpush3.bf16.msra.mxu1 %v2129_v27 }
  0xac   :  { %2023 = vmatprep.subr.bf16.mxu0 %v2130_v28  ;;  %2045 = vmatprep.subr.bf16.mxu1 %v2131_v29 }
  0xaf   :  { %2024 = vmatpush3.bf16.msra.mxu0 %v2132_v30  ;;  %2046 = vmatpush3.bf16.msra.mxu1 %v2133_v31 }
  0xb0   :  { %2025 = vmatprep.subr.bf16.mxu0 %v2134_v32  ;;  %2047 = vmatprep.subr.bf16.mxu1 %v2135_v33 }
  0xb3   :  { %2026 = vmatpush3.bf16.msra.mxu0 %v2136_v34  ;;  %2048 = vmatpush3.bf16.msra.mxu1 %v2137_v35 }
  0xb4   :  { %2055 = vmatprep.subr.bf16.mxu0 %v2138_v36  ;;  %2077 = vmatprep.subr.bf16.mxu1 %v2139_v37 }
 0x129   :  { %v845_v38 = vpop.f32.mrb[0].mxu0  ;;  %v888_v39 = vpop.f32.mrb[0].mxu1 }
 0x12a   :  { %vm983_vm0 = vcmp.gt.f32.partialorder %v845_v38, 0.0  ;;  %1720 = vmax.xlane.f32.xlu0 %v845_v38  ;;  %v847_v40 = vpop.f32.mrb[1].mxu0  ;;  %vm985_vm1 = vcmp.gt.f32.partialorder %v888_v39, 0.0  ;;  %v890_v56 = vpop.f32.mrb[1].mxu1 }
 0x12b   :  { %1727 = vmax.xlane.f32.xlu1 %v847_v40  ;;  %v849_v41 = vpop.f32.mrb[2].mxu0  ;;  %v892_v42 = vpop.f32.mrb[2].mxu1  ;;  %vm986_vm3 = vcmp.gt.f32.partialorder %v890_v56, 0.0  ;;  %vm984_vm7 = vcmp.gt.f32.partialorder %v847_v40, 0.0 }
 0x12c   :  { %vm991_vm2 = vcmp.gt.f32.partialorder %v849_v41, 0.0  ;;  %v851_v43 = vpop.f32.mrb[3].mxu0  ;;  %vm993_vm4 = vcmp.gt.f32.partialorder %v892_v42, 0.0  ;;  %v894_v45 = vpop.f32.mrb[3].mxu1 }
 0x12d   :  { %vm2355_vm5 = vmpackc.low %vm991_vm2, %vm983_vm0  ;;  %vm992_vm6 = vcmp.gt.f32.partialorder %v851_v43, 0.0  ;;  %vm994_vm9 = vcmp.gt.f32.partialorder %v894_v45, 0.0 }
 0x12e   :  { %vm2001_vm8 = vmpackc.low %vm993_vm4, %vm985_vm1  ;;  %1734 = vmax.xlane.f32.xlu0 %v888_v39 }
 0x12f   :  { %vm1995_vm10 = vmpackc.low %vm992_vm6, %vm984_vm7  ;;  %1736 = vmax.xlane.f32.xlu1 %v892_v42 }
 0x130   :  { %vm1999_vm11 = vmpackc.low %vm994_vm9, %vm986_vm3  ;;  %1996 = vmatprep.mubr.msk.bf16.mxu0 %vm1995_vm10, %v2197_v47  ;;  %vm1731_vm9 = vcmask 15368   ;;  %vm1738_vm10 = vcmask 23568  }
 0x131   :  { %2000 = vmatprep.mubr.msk.bf16.mxu1 %vm1999_vm11, %v2197_v47  ;;  %1998 = vmatmul.mubr.msk.bf16.vlgmr.msra.gmra.mrb[8].mxu0 %vm2355_vm5, %v2197_v47  ;;  %vm1745_vm11 = vcmask 31768  }
 0x132   :  { %2002 = vmatmul.mubr.msk.bf16.vlgmr.msra.gmra.mrb[8].mxu1 %vm2001_vm8, %v2197_v47  ;;  %1741 = vmax.xlane.f32.xlu0 %v890_v56  ;;  %vm1724_vm8 = vcmask 7168  }
 0x133   :  { %1729 = vmax.xlane.f32.xlu1 %v851_v43  ;;  %2056 = vmatpush3.bf16.msra.mxu0 %v2140_v46 }
 0x134   :  { %2078 = vmatpush3.bf16.msra.mxu1 %v2141_v48  ;;  %2057 = vmatprep.subr.bf16.mxu0 %v2142_v49 }
 0x135   :  { %2079 = vmatprep.subr.bf16.mxu1 %v2143_v50 }
 0x136   :  { %1722 = vmax.xlane.f32.xlu0 %v849_v41 }
 0x137   :  { %1743 = vmax.xlane.f32.xlu1 %v894_v45  ;;  %2058 = vmatpush3.bf16.msra.mxu0 %v2144_v51 }
 0x138   :  { %2080 = vmatpush3.bf16.msra.mxu1 %v2145_v52  ;;  %2059 = vmatprep.subr.bf16.mxu0 %v2146_v53 }
 0x139   :  { %2081 = vmatprep.subr.bf16.mxu1 %v2147_v54 }
 0x13b   :  { %2060 = vmatpush3.bf16.msra.mxu0 %v2148_v55 }
 0x13c   :  { %2082 = vmatpush3.bf16.msra.mxu1 %v2149_v57  ;;  %2061 = vmatprep.subr.bf16.mxu0 %v2150_v58 }
 0x13d   :  { %2083 = vmatprep.subr.bf16.mxu1 %v2151_v59 }
 0x13f   :  { %2062 = vmatpush3.bf16.msra.mxu0 %v2152_v60 }
 0x140   :  { %2084 = vmatpush3.bf16.msra.mxu1 %v2153_v61  ;;  %2063 = vmatprep.subr.bf16.mxu0 %v2154_v62 }
 0x141   :  { %2085 = vmatprep.subr.bf16.mxu1 %v2155_v63 }
 0x143   :  { %2064 = vmatpush3.bf16.msra.mxu0 %v2156_v0 }
 0x144   :  { %2086 = vmatpush3.bf16.msra.mxu1 %v2157_v1  ;;  %2065 = vmatprep.subr.bf16.mxu0 %v2158_v2 }
 0x145   :  { %2087 = vmatprep.subr.bf16.mxu1 %v2159_v3 }
 0x147   :  { %2066 = vmatpush3.bf16.msra.mxu0 %v2160_v4 }
 0x148   :  { %2088 = vmatpush3.bf16.msra.mxu1 %v2161_v5  ;;  %2067 = vmatprep.subr.bf16.mxu0 %v2162_v6 }
 0x149   :  { %2089 = vmatprep.subr.bf16.mxu1 %v2163_v8 }
 0x14b   :  { %2068 = vmatpush3.bf16.msra.mxu0 %v2164_v9 }
 0x14c   :  { %2090 = vmatpush3.bf16.msra.mxu1 %v2165_v10  ;;  %2069 = vmatprep.subr.bf16.mxu0 %v2166_v11 }
 0x14d   :  { %2091 = vmatprep.subr.bf16.mxu1 %v2167_v12 }
 0x14f   :  { %2070 = vmatpush3.bf16.msra.mxu0 %v2168_v13 }
 0x150   :  { %2092 = vmatpush3.bf16.msra.mxu1 %v2169_v7 }
 0x169   :  { %v931_v14 = vpop.f32.mrb[4].mxu0  ;;  %v974_v15 = vpop.f32.mrb[4].mxu1 }
 0x16a   :  { %1748 = vmax.xlane.f32.xlu0 %v931_v14  ;;  %v933_v16 = vpop.f32.mrb[5].mxu0  ;;  %vm989_vm12 = vcmp.gt.f32.partialorder %v974_v15, 0.0  ;;  %v976_v17 = vpop.f32.mrb[5].mxu1  ;;  %vm987_vm13 = vcmp.gt.f32.partialorder %v931_v14, 0.0 }
 0x16b   :  { %v935_v18 = vpop.f32.mrb[6].mxu0  ;;  %vm990_vm14 = vcmp.gt.f32.partialorder %v976_v17, 0.0  ;;  %v978_v19 = vpop.f32.mrb[6].mxu1  ;;  %vm988_vm5 = vcmp.gt.f32.partialorder %v933_v16, 0.0 }
 0x16c   :  { %vm995_vm15 = vcmp.gt.f32.partialorder %v935_v18, 0.0  ;;  %1750 = vmax.xlane.f32.xlu1 %v935_v18  ;;  %v937_v20 = vpop.f32.mrb[7].mxu0  ;;  %vm997_vm1 = vcmp.gt.f32.partialorder %v978_v19, 0.0  ;;  %v980_v21 = vpop.f32.mrb[7].mxu1 }
 0x16d   :  { %vm2005_vm0 = vmpackc.low %vm995_vm15, %vm987_vm13  ;;  %vm996_vm2 = vcmp.gt.f32.partialorder %v937_v20, 0.0  ;;  %vm998_vm4 = vcmp.gt.f32.partialorder %v980_v21, 0.0  ;;  %vm1759_vm13 = vcmask 48168   ;;  %vm1773_vm15 = vcmask 64568  }
 0x16e   :  { %vm2009_vm3 = vmpackc.low %vm997_vm1, %vm989_vm12  ;;  %1762 = vmax.xlane.f32.xlu0 %v974_v15  ;;  %vm1752_vm12 = vcmask 39968  }
 0x16f   :  { %vm2007_vm6 = vmpackc.low %vm998_vm4, %vm990_vm14  ;;  %vm1766_vm14 = vcmask 56368  }
 0x170   :  { %vm2003_vm7 = vmpackc.low %vm996_vm2, %vm988_vm5  ;;  %2008 = vmatprep.mubr.msk.bf16.mxu1 %vm2007_vm6, %v2197_v47  ;;  %1764 = vmax.xlane.f32.xlu1 %v978_v19 }
 0x171   :  { %2004 = vmatprep.mubr.msk.bf16.mxu0 %vm2003_vm7, %v2197_v47  ;;  %2010 = vmatmul.mubr.msk.bf16.vlgmr.msra.gmra.mrb[12].mxu1 %vm2009_vm3, %v2197_v47 }
 0x172   :  { %2006 = vmatmul.mubr.msk.bf16.vlgmr.msra.gmra.mrb[12].mxu0 %vm2005_vm0, %v2197_v47  ;;  %1755 = vmax.xlane.f32.xlu0 %v933_v16  ;;  %vm1717_vm0 = vcmask 64512  }
 0x174   :  { %1757 = vmax.xlane.f32.xlu1 %v937_v20 }
 0x176   :  { %1769 = vmax.xlane.f32.xlu0 %v976_v17 }
 0x178   :  { %1771 = vmax.xlane.f32.xlu1 %v980_v21 }
 0x1b7   :  { %v1721_v22 = vpop.xlane.xlu0 %1720 }
 0x1b8   :  { %1725 = vst.msk [vmem:[%s2517_s4] sm:$0xff] %vm1724_vm8, %v1721_v22  ;;  %v1728_v23 = vpop.xlane.xlu1 %1727 }
 0x1b9   :  { %1732 = vst.msk [vmem:[%s2517_s4] sm:$0xff] %vm1731_vm9, %v1728_v23 }
 0x1bb   :  { %v1735_v24 = vpop.xlane.xlu0 %1734 }
 0x1bc   :  { %1739 = vst.msk [vmem:[%s2517_s4] sm:$0xff] %vm1738_vm10, %v1735_v24  ;;  %v1737_v25 = vpop.xlane.xlu1 %1736 }
 0x1bf   :  { %v1742_v26 = vpop.xlane.xlu0 %1741 }
 0x1c0   :  { %1746 = vst.msk [vmem:[%s2517_s4] sm:$0xff] %vm1745_vm11, %v1742_v26  ;;  %v1730_v27 = vpop.xlane.xlu1 %1729 }
 0x1c3   :  { %v1723_v28 = vpop.xlane.xlu0 %1722 }
 0x1c4   :  { %1726 = vst.msk [vmem:[%s2517_s4 + $0x8] sm:$0xff] %vm1724_vm8, %v1723_v28  ;;  %v1744_v29 = vpop.xlane.xlu1 %1743 }
 0x1c5   :  { %1733 = vst.msk [vmem:[%s2517_s4 + $0x8] sm:$0xff] %vm1731_vm9, %v1730_v27 }
 0x1c6   :  { %1740 = vst.msk [vmem:[%s2517_s4 + $0x8] sm:$0xff] %vm1738_vm10, %v1737_v25 }
 0x1c7   :  { %1747 = vst.msk [vmem:[%s2517_s4 + $0x8] sm:$0xff] %vm1745_vm11, %v1744_v29 }
 0x1f7   :  { %v1749_v30 = vpop.xlane.xlu0 %1748 }
 0x1f8   :  { %1753 = vst.msk [vmem:[%s2517_s4] sm:$0xff] %vm1752_vm12, %v1749_v30 }
 0x1f9   :  { %v1751_v31 = vpop.xlane.xlu1 %1750 }
 0x1fa   :  { %1754 = vst.msk [vmem:[%s2517_s4 + $0x8] sm:$0xff] %vm1752_vm12, %v1751_v31 }
 0x1fb   :  { %v1763_v32 = vpop.xlane.xlu0 %1762 }
 0x1fd   :  { %v1765_v33 = vpop.xlane.xlu1 %1764 }
 0x1ff   :  { %v1756_v34 = vpop.xlane.xlu0 %1755 }
 0x200   :  { %1760 = vst.msk [vmem:[%s2517_s4] sm:$0xff] %vm1759_vm13, %v1756_v34 }
 0x201   :  { %v1758_v35 = vpop.xlane.xlu1 %1757  ;;  %1767 = vst.msk [vmem:[%s2517_s4] sm:$0xff] %vm1766_vm14, %v1763_v32 }
 0x202   :  { %1761 = vst.msk [vmem:[%s2517_s4 + $0x8] sm:$0xff] %vm1759_vm13, %v1758_v35 }
 0x203   :  { %v1770_v36 = vpop.xlane.xlu0 %1769  ;;  %1768 = vst.msk [vmem:[%s2517_s4 + $0x8] sm:$0xff] %vm1766_vm14, %v1765_v33 }
 0x204   :  { %1774 = vst.msk [vmem:[%s2517_s4] sm:$0xff] %vm1773_vm15, %v1770_v36  ;;  %v2027_v37 = vpop.f32.mrb[8].mxu0 }
 0x205   :  { %v2049_v38 = vpop.f32.mrb[8].mxu1  ;;  %v2028_v39 = vpop.f32.mrb[9].mxu0 }
 0x206   :  { %v2029_v40 = vadd.f32 %v2028_v39, %v2027_v37  ;;  %v2050_v56 = vpop.f32.mrb[9].mxu1  ;;  %v1772_v41 = vpop.xlane.xlu1 %1771 }
 0x207   :  { %v2051_v42 = vadd.f32 %v2050_v56, %v2049_v38  ;;  %v2052_v43 = vpop.f32.mrb[10].mxu1  ;;  %1775 = vst.msk [vmem:[%s2517_s4 + $0x8] sm:$0xff] %vm1773_vm15, %v1772_v41  ;;  %v2030_v44 = vpop.f32.mrb[10].mxu0 }
 0x208   :  { %v2031_v45 = vpop.f32.mrb[11].mxu0  ;;  %v2053_v46 = vpop.f32.mrb[11].mxu1 }
 0x209   :  { %v1627_v47 = vadd.f32 %v2051_v42, %v2029_v40  ;;  %v2032_v48 = vadd.f32 %v2031_v45, %v2030_v44  ;;  %v2054_v49 = vadd.f32 %v2053_v46, %v2052_v43 }
 0x20b   :  { %v1630_v50 = vadd.f32 %v2054_v49, %v2032_v48 }
 0x244   :  { %v2093_v51 = vpop.f32.mrb[12].mxu1 }
 0x245   :  { %v2071_v52 = vpop.f32.mrb[12].mxu0  ;;  %v2094_v53 = vpop.f32.mrb[13].mxu1 }
 0x246   :  { %v2072_v54 = vpop.f32.mrb[13].mxu0  ;;  %v2095_v55 = vadd.f32 %v2094_v53, %v2093_v51  ;;  %v2096_v57 = vpop.f32.mrb[14].mxu1 }
 0x247   :  { %v2073_v58 = vadd.f32 %v2072_v54, %v2071_v52  ;;  %v2074_v59 = vpop.f32.mrb[14].mxu0  ;;  %v2097_v60 = vpop.f32.mrb[15].mxu1 }
 0x248   :  { %v2075_v61 = vpop.f32.mrb[15].mxu0  ;;  %v2098_v62 = vadd.f32 %v2097_v60, %v2096_v57 }
 0x249   :  { %v1668_v63 = vadd.f32 %v2073_v58, %v1627_v47  ;;  %v2076_v0 = vadd.f32 %v2075_v61, %v2074_v59 }
 0x24b   :  { %v1709_v1 = vadd.f32 %v2095_v55, %v1668_v63  ;;  %v1671_v2 = vadd.f32 %v2076_v0, %v1630_v50 }
 0x24d   :  { %v1715_v3 = vmul.f32 0.0078125, %v1709_v1  ;;  %v1712_v4 = vadd.f32 %v2098_v62, %v1671_v2 }
 0x24f   :  { %1718 = vst.msk [vmem:[%s2516_s3] sm:$0xff] %vm1717_vm0, %v1715_v3  ;;  %v1716_v5 = vmul.f32 0.0078125, %v1712_v4 }
 0x251   :  { %1719 = vst.msk [vmem:[%s2516_s3 + $0x8] sm:$0xff] %vm1717_vm0, %v1716_v5 }
 0x252   :  { %1784 = vsyncpa [#allocation3], 1 }

// kernel: tpu_custom_call.1
= control target key start
LH: loop header
LB: loop body
LE: loop exit
PB: predicated region body
PF: predicated region fallthrough
CT: control target
= control target key end

     0   :  { %10 = vsyncpa [#allocation3], 0  ;;  %s2194_s15 = smov [#allocation2]   ;;  %s2513_s0 = inlined_call_operand.vmem [shape: bf16[16,256], index: 0, kind: input, shape index: {}]   ;;  %s2514_s1 = inlined_call_operand.hbm [shape: bf16[256,1024], index: 1, kind: input, shape index: {}]   ;;  %s2515_s2 = inlined_call_operand.vmem [shape: bf16[1024,8], index: 2, kind: input, shape index: {}]   ;;  %s2516_s3 = inlined_call_operand.vmem [shape: f32[1,16,8], index: 3, kind: output, shape index: {0}]   ;;  %s2517_s4 = inlined_call_operand.vmem [shape: f32[1,16,8], index: 4, kind: output, shape index: {1}]  }
   0x1   :  { %s18_s16 = sshll.u32 %s2194_s15, 4  ;;  %s2170_s19 = scalar_lea.hbm %s2514_s1, 16384  ;;  %s19_s16 = int_to_ptr.vmem [resolvable:$true] %s18_s16 }
   0x2   :  { %p2171_p0 = scmp.ne.s32.totalorder %s2514_s1, %s2170_s19  ;;  %p2174_p1 = scmp.lt.u32.totalorder %s2170_s19, %s2514_s1 }
   0x4   :  { %p2176_p2 = pnand %p2174_p1, %p2171_p0 }
   0x6   :  { %2179 = shalt.err (!%p2176_p2)
}
   0x7   :  { %s2180_s24 = scalar_lea.vmem %s19_s16, 16384  ;;  %p2185_p4 = scmp.lt.s32.totalorder %s19_s16, %s19_s16 }
   0x8   :  { %p2181_p3 = scmp.ne.s32.totalorder %s19_s16, %s2180_s24  ;;  %p2186_p5 = scmp.lt.s32.totalorder %s2180_s24, %s2180_s24 }
   0xa   :  { %p2187_p6 = por %p2186_p5, %p2185_p4 }
   0xc   :  { %p2188_p7 = pnand %p2187_p6, %p2181_p3 }
   0xe   :  { %2191 = shalt.err (!%p2188_p7)
}
   0xf   :  { %s2195_s25 = smov 512   ;;  %s2196_s26 = smov 32  }
  0x10   :  { %24 = dma.hbm_to_vmem [thread:$0]  %s2514_s1, 16384, %s19_s16, [#allocation3], %s2195_s25, %s2195_s25, %s2196_s26  }
  0x11   :  { %2192 = dma.done.wait [#allocation3], 16384  }
  0x12   :  { %2193 = vsyncadd [#allocation3], 4294950912  ;;  %v33_v0 = vld [vmem:[#allocation2] sm:$0xff]  ;;  %v34_v2 = vld [vmem:[#allocation2 + $0x8] sm:$0xff] }
  0x13   :  { %v37_v1 = vld [vmem:[#allocation2 + $0x20] sm:$0xff]  ;;  %v38_v4 = vld [vmem:[#allocation2 + $0x28] sm:$0xff] }
  0x14   :  { %v1788_v3 = vcombine.high %v33_v0, %v37_v1  ;;  %v1787_v5 = vcombine.low %v33_v0, %v37_v1  ;;  %v41_v6 = vld [vmem:[#allocation2 + $0x40] sm:$0xff]  ;;  %v1790_v8 = vcombine.high %v34_v2, %v38_v4  ;;  %v1789_v9 = vcombine.low %v34_v2, %v38_v4  ;;  %v42_v11 = vld [vmem:[#allocation2 + $0x48] sm:$0xff] }
  0x15   :  { %v45_v7 = vld [vmem:[#allocation2 + $0x60] sm:$0xff]  ;;  %v46_v12 = vld [vmem:[#allocation2 + $0x68] sm:$0xff] }
  0x16   :  { %v1796_v10 = vcombine.high %v41_v6, %v45_v7  ;;  %v49_v13 = vld [vmem:[#allocation2 + $0x80] sm:$0xff]  ;;  %811 = vmatprep.subr.bf16.mxu0 %v1788_v3  ;;  %v1798_v14 = vcombine.high %v42_v11, %v46_v12  ;;  %v50_v16 = vld [vmem:[#allocation2 + $0x88] sm:$0xff]  ;;  %854 = vmatprep.subr.bf16.mxu1 %v1790_v8  ;;  %v1795_v18 = vcombine.low %v41_v6, %v45_v7 }
  0x17   :  { %v53_v15 = vld [vmem:[#allocation2 + $0xa0] sm:$0xff]  ;;  %v54_v17 = vld [vmem:[#allocation2 + $0xa8] sm:$0xff]  ;;  %812 = vmatpush1.bf16.msra.mxu0 %v1787_v5  ;;  %855 = vmatpush1.bf16.msra.mxu1 %v1789_v9  ;;  %v1797_v19 = vcombine.low %v42_v11, %v46_v12 }
  0x18   :  { %813 = vmatprep.subr.bf16.mxu0 %v1796_v10  ;;  %v1804_v20 = vcombine.high %v49_v13, %v53_v15  ;;  %856 = vmatprep.subr.bf16.mxu1 %v1798_v14  ;;  %v1806_v21 = vcombine.high %v50_v16, %v54_v17  ;;  %v57_v22 = vld [vmem:[#allocation2 + $0xc0] sm:$0xff]  ;;  %v58_v24 = vld [vmem:[#allocation2 + $0xc8] sm:$0xff]  ;;  %v1803_v26 = vcombine.low %v49_v13, %v53_v15 }
  0x19   :  { %v61_v23 = vld [vmem:[#allocation2 + $0xe0] sm:$0xff]  ;;  %v62_v25 = vld [vmem:[#allocation2 + $0xe8] sm:$0xff]  ;;  %v1805_v27 = vcombine.low %v50_v16, %v54_v17 }
  0x1a   :  { %v1812_v28 = vcombine.high %v57_v22, %v61_v23  ;;  %v1814_v29 = vcombine.high %v58_v24, %v62_v25  ;;  %v65_v30 = vld [vmem:[#allocation2 + $0x100] sm:$0xff]  ;;  %v66_v32 = vld [vmem:[#allocation2 + $0x108] sm:$0xff]  ;;  %v1811_v34 = vcombine.low %v57_v22, %v61_v23  ;;  %v1813_v35 = vcombine.low %v58_v24, %v62_v25 }
  0x1b   :  { %814 = vmatpush1.bf16.msra.mxu0 %v1795_v18  ;;  %857 = vmatpush1.bf16.msra.mxu1 %v1797_v19  ;;  %v69_v31 = vld [vmem:[#allocation2 + $0x120] sm:$0xff]  ;;  %v70_v33 = vld [vmem:[#allocation2 + $0x128] sm:$0xff] }
  0x1c   :  { %815 = vmatprep.subr.bf16.mxu0 %v1804_v20  ;;  %858 = vmatprep.subr.bf16.mxu1 %v1806_v21  ;;  %v1820_v36 = vcombine.high %v65_v30, %v69_v31  ;;  %v1822_v37 = vcombine.high %v66_v32, %v70_v33  ;;  %v73_v38 = vld [vmem:[#allocation2 + $0x140] sm:$0xff]  ;;  %v74_v40 = vld [vmem:[#allocation2 + $0x148] sm:$0xff]  ;;  %v1819_v42 = vcombine.low %v65_v30, %v69_v31 }
  0x1d   :  { %v77_v39 = vld [vmem:[#allocation2 + $0x160] sm:$0xff]  ;;  %v78_v41 = vld [vmem:[#allocation2 + $0x168] sm:$0xff]  ;;  %v1821_v43 = vcombine.low %v66_v32, %v70_v33 }
  0x1e   :  { %v1828_v44 = vcombine.high %v73_v38, %v77_v39  ;;  %v1830_v45 = vcombine.high %v74_v40, %v78_v41  ;;  %v81_v46 = vld [vmem:[#allocation2 + $0x180] sm:$0xff]  ;;  %v82_v48 = vld [vmem:[#allocation2 + $0x188] sm:$0xff]  ;;  %v1827_v50 = vcombine.low %v73_v38, %v77_v39  ;;  %v1829_v51 = vcombine.low %v74_v40, %v78_v41 }
  0x1f   :  { %816 = vmatpush1.bf16.msra.mxu0 %v1803_v26  ;;  %859 = vmatpush1.bf16.msra.mxu1 %v1805_v27  ;;  %v85_v47 = vld [vmem:[#allocation2 + $0x1a0] sm:$0xff]  ;;  %v86_v49 = vld [vmem:[#allocation2 + $0x1a8] sm:$0xff] }
  0x20   :  { %817 = vmatprep.subr.bf16.mxu0 %v1812_v28  ;;  %860 = vmatprep.subr.bf16.mxu1 %v1814_v29  ;;  %v1836_v52 = vcombine.high %v81_v46, %v85_v47  ;;  %v1838_v53 = vcombine.high %v82_v48, %v86_v49  ;;  %v89_v54 = vld [vmem:[#allocation2 + $0x1c0] sm:$0xff]  ;;  %v90_v57 = vld [vmem:[#allocation2 + $0x1c8] sm:$0xff]  ;;  %v1835_v59 = vcombine.low %v81_v46, %v85_v47 }
  0x21   :  { %v93_v55 = vld [vmem:[#allocation2 + $0x1e0] sm:$0xff]  ;;  %v94_v58 = vld [vmem:[#allocation2 + $0x1e8] sm:$0xff]  ;;  %v1837_v60 = vcombine.low %v82_v48, %v86_v49 }
  0x22   :  { %v2238_v56 = vld [vmem:[%s2513_s0 + $0x4] ss:$8 sps:$4 sm:$0xff]   ;;  %v1844_v61 = vcombine.high %v89_v54, %v93_v55  ;;  %v1846_v62 = vcombine.high %v90_v57, %v94_v58  ;;  %v1843_v3 = vcombine.low %v89_v54, %v93_v55  ;;  %v1845_v4 = vcombine.low %v90_v57, %v94_v58 }
  0x23   :  { %818 = vmatpush1.bf16.msra.mxu0 %v1811_v34  ;;  %861 = vmatpush1.bf16.msra.mxu1 %v1813_v35  ;;  %v97_v63 = vld [vmem:[#allocation2 + $0x200] sm:$0xff]  ;;  %v98_v1 = vld [vmem:[#allocation2 + $0x208] sm:$0xff] }
  0x24   :  { %819 = vmatprep.subr.bf16.mxu0 %v1820_v36  ;;  %862 = vmatprep.subr.bf16.mxu1 %v1822_v37  ;;  %v101_v0 = vld [vmem:[#allocation2 + $0x220] sm:$0xff]  ;;  %v102_v2 = vld [vmem:[#allocation2 + $0x228] sm:$0xff] }
  0x25   :  { %843 = vmatprep.mubr.bf16.mxu0 %v2238_v56  ;;  %886 = vmatprep.mubr.bf16.mxu1 %v2238_v56  ;;  %v1852_v5 = vcombine.high %v97_v63, %v101_v0  ;;  %v1854_v6 = vcombine.high %v98_v1, %v102_v2  ;;  %v105_v7 = vld [vmem:[#allocation2 + $0x240] sm:$0xff]  ;;  %v106_v9 = vld [vmem:[#allocation2 + $0x248] sm:$0xff]  ;;  %v1851_v11 = vcombine.low %v97_v63, %v101_v0  ;;  %v39_v0 = vld [vmem:[#allocation2 + $0x30] sm:$0xff] }
  0x26   :  { %v109_v8 = vld [vmem:[#allocation2 + $0x260] sm:$0xff]  ;;  %v110_v10 = vld [vmem:[#allocation2 + $0x268] sm:$0xff]  ;;  %v1853_v12 = vcombine.low %v98_v1, %v102_v2  ;;  %v36_v2 = vld [vmem:[#allocation2 + $0x18] sm:$0xff] }
  0x27   :  { %820 = vmatpush1.bf16.msra.mxu0 %v1819_v42  ;;  %863 = vmatpush1.bf16.msra.mxu1 %v1821_v43  ;;  %v1860_v13 = vcombine.high %v105_v7, %v109_v8  ;;  %v1862_v14 = vcombine.high %v106_v9, %v110_v10  ;;  %v113_v15 = vld [vmem:[#allocation2 + $0x280] sm:$0xff]  ;;  %v114_v17 = vld [vmem:[#allocation2 + $0x288] sm:$0xff]  ;;  %v1859_v19 = vcombine.low %v105_v7, %v109_v8 }
  0x28   :  { %821 = vmatprep.subr.bf16.mxu0 %v1828_v44  ;;  %864 = vmatprep.subr.bf16.mxu1 %v1830_v45  ;;  %v117_v16 = vld [vmem:[#allocation2 + $0x2a0] sm:$0xff]  ;;  %v118_v18 = vld [vmem:[#allocation2 + $0x2a8] sm:$0xff]  ;;  %v1861_v20 = vcombine.low %v106_v9, %v110_v10  ;;  %v47_v9 = vld [vmem:[#allocation2 + $0x70] sm:$0xff] }
  0x29   :  { %v1868_v21 = vcombine.high %v113_v15, %v117_v16  ;;  %v1870_v22 = vcombine.high %v114_v17, %v118_v18  ;;  %v121_v23 = vld [vmem:[#allocation2 + $0x2c0] sm:$0xff]  ;;  %v122_v25 = vld [vmem:[#allocation2 + $0x2c8] sm:$0xff]  ;;  %v1867_v27 = vcombine.low %v113_v15, %v117_v16  ;;  %v1869_v28 = vcombine.low %v114_v17, %v118_v18  ;;  %v55_v17 = vld [vmem:[#allocation2 + $0xb0] sm:$0xff] }
  0x2a   :  { %v125_v24 = vld [vmem:[#allocation2 + $0x2e0] sm:$0xff]  ;;  %v126_v26 = vld [vmem:[#allocation2 + $0x2e8] sm:$0xff] }
  0x2b   :  { %822 = vmatpush1.bf16.msra.mxu0 %v1827_v50  ;;  %865 = vmatpush1.bf16.msra.mxu1 %v1829_v51  ;;  %v1876_v29 = vcombine.high %v121_v23, %v125_v24  ;;  %v1878_v30 = vcombine.high %v122_v25, %v126_v26  ;;  %v129_v31 = vld [vmem:[#allocation2 + $0x300] sm:$0xff]  ;;  %v130_v33 = vld [vmem:[#allocation2 + $0x308] sm:$0xff]  ;;  %v1875_v35 = vcombine.low %v121_v23, %v125_v24  ;;  %v63_v23 = vld [vmem:[#allocation2 + $0xf0] sm:$0xff] }
  0x2c   :  { %823 = vmatprep.subr.bf16.mxu0 %v1836_v52  ;;  %866 = vmatprep.subr.bf16.mxu1 %v1838_v53  ;;  %v133_v32 = vld [vmem:[#allocation2 + $0x320] sm:$0xff]  ;;  %v134_v34 = vld [vmem:[#allocation2 + $0x328] sm:$0xff]  ;;  %v1877_v37 = vcombine.low %v122_v25, %v126_v26  ;;  %v60_v26 = vld [vmem:[#allocation2 + $0xd8] sm:$0xff] }
  0x2d   :  { %v137_v36 = vld [vmem:[#allocation2 + $0x340] sm:$0xff]  ;;  %v1884_v38 = vcombine.high %v129_v31, %v133_v32  ;;  %v1886_v40 = vcombine.high %v130_v33, %v134_v34  ;;  %v138_v41 = vld [vmem:[#allocation2 + $0x348] sm:$0xff]  ;;  %v1883_v43 = vcombine.low %v129_v31, %v133_v32  ;;  %v1885_v45 = vcombine.low %v130_v33, %v134_v34  ;;  %v71_v31 = vld [vmem:[#allocation2 + $0x130] sm:$0xff] }
  0x2e   :  { %v141_v39 = vld [vmem:[#allocation2 + $0x360] sm:$0xff]  ;;  %v142_v42 = vld [vmem:[#allocation2 + $0x368] sm:$0xff]  ;;  %v68_v34 = vld [vmem:[#allocation2 + $0x118] sm:$0xff] }
  0x2f   :  { %824 = vmatpush1.bf16.msra.mxu0 %v1835_v59  ;;  %867 = vmatpush1.bf16.msra.mxu1 %v1837_v60  ;;  %v145_v44 = vld [vmem:[#allocation2 + $0x380] sm:$0xff]  ;;  %v1892_v46 = vcombine.high %v137_v36, %v141_v39  ;;  %v1894_v48 = vcombine.high %v138_v41, %v142_v42  ;;  %v146_v49 = vld [vmem:[#allocation2 + $0x388] sm:$0xff]  ;;  %v1891_v51 = vcombine.low %v137_v36, %v141_v39  ;;  %v79_v39 = vld [vmem:[#allocation2 + $0x170] sm:$0xff] }
  0x30   :  { %825 = vmatprep.subr.bf16.mxu0 %v1844_v61  ;;  %868 = vmatprep.subr.bf16.mxu1 %v1846_v62  ;;  %v149_v47 = vld [vmem:[#allocation2 + $0x3a0] sm:$0xff]  ;;  %v150_v50 = vld [vmem:[#allocation2 + $0x3a8] sm:$0xff]  ;;  %v1893_v53 = vcombine.low %v138_v41, %v142_v42  ;;  %v35_v61 = vld [vmem:[#allocation2 + $0x10] sm:$0xff] }
  0x31   :  { %v153_v52 = vld [vmem:[#allocation2 + $0x3c0] sm:$0xff]  ;;  %v1900_v54 = vcombine.high %v145_v44, %v149_v47  ;;  %v1902_v57 = vcombine.high %v146_v49, %v150_v50  ;;  %v154_v58 = vld [vmem:[#allocation2 + $0x3c8] sm:$0xff]  ;;  %v1899_v60 = vcombine.low %v145_v44, %v149_v47  ;;  %v1901_v62 = vcombine.low %v146_v49, %v150_v50  ;;  %v76_v41 = vld [vmem:[#allocation2 + $0x158] sm:$0xff] }
  0x32   :  { %v157_v55 = vld [vmem:[#allocation2 + $0x3e0] sm:$0xff]  ;;  %v158_v59 = vld [vmem:[#allocation2 + $0x3e8] sm:$0xff]  ;;  %v1792_v8 = vcombine.high %v35_v61, %v39_v0  ;;  %v80_v42 = vld [vmem:[#allocation2 + $0x178] sm:$0xff] }
  0x33   :  { %826 = vmatpush1.bf16.msra.mxu0 %v1843_v3  ;;  %869 = vmatpush1.bf16.msra.mxu1 %v1845_v4  ;;  %v1908_v63 = vcombine.high %v153_v52, %v157_v55  ;;  %v1910_v1 = vcombine.high %v154_v58, %v158_v59  ;;  %v40_v3 = vld [vmem:[#allocation2 + $0x38] sm:$0xff]  ;;  %v1907_v4 = vcombine.low %v153_v52, %v157_v55  ;;  %v2245_v7 = vld [vmem:[%s2513_s0] ss:$8 sps:$4 sm:$0xff]  }
  0x34   :  { %827 = vmatprep.subr.bf16.mxu0 %v1852_v5  ;;  %870 = vmatprep.subr.bf16.mxu1 %v1854_v6  ;;  %v43_v5 = vld [vmem:[#allocation2 + $0x50] sm:$0xff]  ;;  %v1909_v6 = vcombine.low %v154_v58, %v158_v59  ;;  %v1794_v10 = vcombine.high %v36_v2, %v40_v3  ;;  %v1793_v15 = vcombine.low %v36_v2, %v40_v3  ;;  %v84_v49 = vld [vmem:[#allocation2 + $0x198] sm:$0xff] }
  0x35   :  { %v1800_v16 = vcombine.high %v43_v5, %v47_v9  ;;  %v88_v50 = vld [vmem:[#allocation2 + $0x1b8] sm:$0xff]  ;;  %v1833_v55 = vcombine.low %v76_v41, %v80_v42 }
  0x36   :  { %v92_v58 = vld [vmem:[#allocation2 + $0x1d8] sm:$0xff] }
  0x37   :  { %828 = vmatpush1.bf16.msra.mxu0 %v1851_v11  ;;  %871 = vmatpush1.bf16.msra.mxu1 %v1853_v12  ;;  %v44_v11 = vld [vmem:[#allocation2 + $0x58] sm:$0xff] }
  0x38   :  { %829 = vmatprep.subr.bf16.mxu0 %v1860_v13  ;;  %872 = vmatprep.subr.bf16.mxu1 %v1862_v14  ;;  %v48_v12 = vld [vmem:[#allocation2 + $0x78] sm:$0xff]  ;;  %v1791_v13 = vcombine.low %v35_v61, %v39_v0  ;;  %v51_v14 = vld [vmem:[#allocation2 + $0x90] sm:$0xff]  ;;  %v1841_v0 = vcombine.low %v84_v49, %v88_v50 }
  0x39   :  { %v1802_v18 = vcombine.high %v44_v11, %v48_v12  ;;  %v1801_v24 = vcombine.low %v44_v11, %v48_v12  ;;  %v1808_v25 = vcombine.high %v51_v14, %v55_v17  ;;  %v96_v59 = vld [vmem:[#allocation2 + $0x1f8] sm:$0xff] }
  0x3a   :  { %v100_v2 = vld [vmem:[#allocation2 + $0x218] sm:$0xff] }
  0x3b   :  { %830 = vmatpush1.bf16.msra.mxu0 %v1859_v19  ;;  %873 = vmatpush1.bf16.msra.mxu1 %v1861_v20  ;;  %v52_v19 = vld [vmem:[#allocation2 + $0x98] sm:$0xff] }
  0x3c   :  { %831 = vmatprep.subr.bf16.mxu0 %v1868_v21  ;;  %874 = vmatprep.subr.bf16.mxu1 %v1870_v22  ;;  %v56_v20 = vld [vmem:[#allocation2 + $0xb8] sm:$0xff]  ;;  %v1799_v21 = vcombine.low %v43_v5, %v47_v9  ;;  %v59_v22 = vld [vmem:[#allocation2 + $0xd0] sm:$0xff]  ;;  %v1849_v9 = vcombine.low %v92_v58, %v96_v59 }
  0x3d   :  { %v1809_v32 = vcombine.low %v52_v19, %v56_v20  ;;  %v1816_v33 = vcombine.high %v59_v22, %v63_v23  ;;  %v104_v3 = vld [vmem:[#allocation2 + $0x238] sm:$0xff] }
  0x3e   :  { %v1858_v11 = vcombine.high %v100_v2, %v104_v3  ;;  %v108_v12 = vld [vmem:[#allocation2 + $0x258] sm:$0xff] }
  0x3f   :  { %832 = vmatpush1.bf16.msra.mxu0 %v1867_v27  ;;  %875 = vmatpush1.bf16.msra.mxu1 %v1869_v28  ;;  %v64_v27 = vld [vmem:[#allocation2 + $0xf8] sm:$0xff]  ;;  %v1810_v28 = vcombine.high %v52_v19, %v56_v20  ;;  %v119_v19 = vld [vmem:[#allocation2 + $0x2b0] sm:$0xff] }
  0x40   :  { %833 = vmatprep.subr.bf16.mxu0 %v1876_v29  ;;  %876 = vmatprep.subr.bf16.mxu1 %v1878_v30  ;;  %v1807_v29 = vcombine.low %v51_v14, %v55_v17  ;;  %v67_v30 = vld [vmem:[#allocation2 + $0x110] sm:$0xff]  ;;  %v1818_v36 = vcombine.high %v60_v26, %v64_v27  ;;  %v116_v20 = vld [vmem:[#allocation2 + $0x298] sm:$0xff] }
  0x41   :  { %v1823_v44 = vcombine.low %v67_v30, %v71_v31 }
  0x43   :  { %834 = vmatpush1.bf16.msra.mxu0 %v1875_v35  ;;  %877 = vmatpush1.bf16.msra.mxu1 %v1877_v37  ;;  %v72_v35 = vld [vmem:[#allocation2 + $0x138] sm:$0xff]  ;;  %v1815_v37 = vcombine.low %v59_v22, %v63_v23 }
  0x44   :  { %835 = vmatprep.subr.bf16.mxu0 %v1884_v38  ;;  %878 = vmatprep.subr.bf16.mxu1 %v1886_v40  ;;  %v75_v38 = vld [vmem:[#allocation2 + $0x150] sm:$0xff]  ;;  %v1817_v40 = vcombine.low %v60_v26, %v64_v27  ;;  %v1825_v47 = vcombine.low %v68_v34, %v72_v35 }
  0x45   :  { %v1831_v52 = vcombine.low %v75_v38, %v79_v39  ;;  %v123_v26 = vld [vmem:[#allocation2 + $0x2d0] sm:$0xff] }
  0x46   :  { %v127_v27 = vld [vmem:[#allocation2 + $0x2f0] sm:$0xff] }
  0x47   :  { %836 = vmatpush1.bf16.msra.mxu0 %v1883_v43  ;;  %879 = vmatpush1.bf16.msra.mxu1 %v1885_v45  ;;  %v1826_v43 = vcombine.high %v68_v34, %v72_v35  ;;  %v83_v45 = vld [vmem:[#allocation2 + $0x190] sm:$0xff] }
  0x48   :  { %837 = vmatprep.subr.bf16.mxu0 %v1892_v46  ;;  %880 = vmatprep.subr.bf16.mxu1 %v1894_v48  ;;  %v87_v46 = vld [vmem:[#allocation2 + $0x1b0] sm:$0xff]  ;;  %v1832_v48 = vcombine.high %v75_v38, %v79_v39  ;;  %v1879_v38 = vcombine.low %v123_v26, %v127_v27 }
  0x49   :  { %v1839_v61 = vcombine.low %v83_v45, %v87_v46  ;;  %v131_v34 = vld [vmem:[#allocation2 + $0x310] sm:$0xff] }
  0x4a   :  { %v135_v35 = vld [vmem:[#allocation2 + $0x330] sm:$0xff] }
  0x4b   :  { %838 = vmatpush1.bf16.msra.mxu0 %v1891_v51  ;;  %881 = vmatpush1.bf16.msra.mxu1 %v1893_v53  ;;  %v1834_v51 = vcombine.high %v76_v41, %v80_v42  ;;  %v91_v53 = vld [vmem:[#allocation2 + $0x1d0] sm:$0xff] }
  0x4c   :  { %839 = vmatprep.subr.bf16.mxu0 %v1900_v54  ;;  %882 = vmatprep.subr.bf16.mxu1 %v1902_v57  ;;  %v95_v54 = vld [vmem:[#allocation2 + $0x1f0] sm:$0xff]  ;;  %v1840_v57 = vcombine.high %v83_v45, %v87_v46  ;;  %v1887_v45 = vcombine.low %v131_v34, %v135_v35 }
  0x4d   :  { %v1847_v5 = vcombine.low %v91_v53, %v95_v54  ;;  %v139_v41 = vld [vmem:[#allocation2 + $0x350] sm:$0xff] }
  0x4e   :  { %v143_v42 = vld [vmem:[#allocation2 + $0x370] sm:$0xff] }
  0x4f   :  { %840 = vmatpush1.bf16.msra.mxu0 %v1899_v60  ;;  %883 = vmatpush1.bf16.msra.mxu1 %v1901_v62  ;;  %v1842_v60 = vcombine.high %v84_v49, %v88_v50  ;;  %v99_v62 = vld [vmem:[#allocation2 + $0x210] sm:$0xff] }
  0x50   :  { %841 = vmatprep.subr.bf16.mxu0 %v1908_v63  ;;  %884 = vmatprep.subr.bf16.mxu1 %v1910_v1  ;;  %v103_v63 = vld [vmem:[#allocation2 + $0x230] sm:$0xff]  ;;  %v1848_v1 = vcombine.high %v91_v53, %v95_v54  ;;  %v1895_v53 = vcombine.low %v139_v41, %v143_v42 }
  0x51   :  { %v1855_v14 = vcombine.low %v99_v62, %v103_v63  ;;  %v147_v49 = vld [vmem:[#allocation2 + $0x390] sm:$0xff] }
  0x52   :  { %v151_v50 = vld [vmem:[#allocation2 + $0x3b0] sm:$0xff] }
  0x53   :  { %842 = vmatpush1.bf16.msra.mxu0 %v1907_v4  ;;  %885 = vmatpush1.bf16.msra.mxu1 %v1909_v6  ;;  %v1850_v4 = vcombine.high %v92_v58, %v96_v59  ;;  %v107_v6 = vld [vmem:[#allocation2 + $0x250] sm:$0xff] }
  0x54   :  { %897 = vmatprep.subr.bf16.mxu0 %v1792_v8  ;;  %940 = vmatprep.subr.bf16.mxu1 %v1794_v10  ;;  %v111_v8 = vld [vmem:[#allocation2 + $0x270] sm:$0xff]  ;;  %v1856_v10 = vcombine.high %v99_v62, %v103_v63  ;;  %v1903_v62 = vcombine.low %v147_v49, %v151_v50 }
  0x55   :  { %v1863_v22 = vcombine.low %v107_v6, %v111_v8  ;;  %v155_v58 = vld [vmem:[#allocation2 + $0x3d0] sm:$0xff] }
  0x56   :  { %844 = vmatmul.mubr.bf16.vlgmr.msra.gmra.mrb[0].mxu0 %v2245_v7  ;;  %887 = vmatmul.mubr.bf16.vlgmr.msra.gmra.mrb[0].mxu1 %v2245_v7  ;;  %v159_v59 = vld [vmem:[#allocation2 + $0x3f0] sm:$0xff] }
  0x57   :  { %898 = vmatpush1.bf16.msra.mxu0 %v1791_v13  ;;  %941 = vmatpush1.bf16.msra.mxu1 %v1793_v15  ;;  %v112_v13 = vld [vmem:[#allocation2 + $0x278] sm:$0xff]  ;;  %v1857_v15 = vcombine.low %v100_v2, %v104_v3  ;;  %v1911_v2 = vcombine.low %v155_v58, %v159_v59 }
  0x58   :  { %899 = vmatprep.subr.bf16.mxu0 %v1800_v16  ;;  %942 = vmatprep.subr.bf16.mxu1 %v1802_v18  ;;  %v1864_v16 = vcombine.high %v107_v6, %v111_v8  ;;  %v1866_v17 = vcombine.high %v108_v12, %v112_v13  ;;  %v115_v18 = vld [vmem:[#allocation2 + $0x290] sm:$0xff]  ;;  %v1865_v23 = vcombine.low %v108_v12, %v112_v13  ;;  %v2108_v6 = vld [vmem:[%s2515_s2] sm:$0xff]   ;;  %v2113_v12 = vld [vmem:[%s2515_s2 + $0x88] sm:$0xff]  }
  0x59   :  { %929 = vmatprep.mubr.bf16.mxu0 %v2238_v56  ;;  %972 = vmatprep.mubr.bf16.mxu1 %v2238_v56  ;;  %v1824_v56 = vcombine.high %v67_v30, %v71_v31  ;;  %v1871_v30 = vcombine.low %v115_v18, %v119_v19  ;;  %v2109_v8 = vld [vmem:[%s2515_s2 + $0x80] sm:$0xff]   ;;  %v2114_v13 = vld [vmem:[%s2515_s2 + $0x50] sm:$0xff]  }
  0x5b   :  { %900 = vmatpush1.bf16.msra.mxu0 %v1799_v21  ;;  %943 = vmatpush1.bf16.msra.mxu1 %v1801_v24  ;;  %v120_v21 = vld [vmem:[#allocation2 + $0x2b8] sm:$0xff]  ;;  %v1872_v24 = vcombine.high %v115_v18, %v119_v19 }
  0x5c   :  { %901 = vmatprep.subr.bf16.mxu0 %v1808_v25  ;;  %944 = vmatprep.subr.bf16.mxu1 %v1810_v28  ;;  %v1874_v25 = vcombine.high %v116_v20, %v120_v21  ;;  %v124_v28 = vld [vmem:[#allocation2 + $0x2d8] sm:$0xff]  ;;  %v1873_v31 = vcombine.low %v116_v20, %v120_v21  ;;  %v2122_v20 = vld [vmem:[%s2515_s2 + $0x60] sm:$0xff]  }
  0x5d   :  { %v2120_v18 = vld [vmem:[%s2515_s2 + $0x18] sm:$0xff]   ;;  %v2123_v21 = vld [vmem:[%s2515_s2 + $0xe0] sm:$0xff]  }
  0x5e   :  { %v2121_v19 = vld [vmem:[%s2515_s2 + $0x98] sm:$0xff]  }
  0x5f   :  { %902 = vmatpush1.bf16.msra.mxu0 %v1807_v29  ;;  %945 = vmatpush1.bf16.msra.mxu1 %v1809_v32  ;;  %v128_v29 = vld [vmem:[#allocation2 + $0x2f8] sm:$0xff]  ;;  %v1880_v32 = vcombine.high %v123_v26, %v127_v27  ;;  %v2128_v26 = vld [vmem:[%s2515_s2 + $0x28] sm:$0xff]  }
  0x60   :  { %903 = vmatprep.subr.bf16.mxu0 %v1816_v33  ;;  %946 = vmatprep.subr.bf16.mxu1 %v1818_v36  ;;  %v1882_v33 = vcombine.high %v124_v28, %v128_v29  ;;  %v132_v36 = vld [vmem:[#allocation2 + $0x318] sm:$0xff]  ;;  %v1881_v39 = vcombine.low %v124_v28, %v128_v29  ;;  %v2129_v27 = vld [vmem:[%s2515_s2 + $0xa8] sm:$0xff]   ;;  %v2130_v28 = vld [vmem:[%s2515_s2 + $0x70] sm:$0xff]  }
  0x61   :  { %v2131_v29 = vld [vmem:[%s2515_s2 + $0xf0] sm:$0xff]  }
  0x63   :  { %904 = vmatpush1.bf16.msra.mxu0 %v1815_v37  ;;  %947 = vmatpush1.bf16.msra.mxu1 %v1817_v40  ;;  %v136_v37 = vld [vmem:[#allocation2 + $0x338] sm:$0xff]  ;;  %v1888_v40 = vcombine.high %v131_v34, %v135_v35 }
  0x64   :  { %905 = vmatprep.subr.bf16.mxu0 %v1824_v56  ;;  %948 = vmatprep.subr.bf16.mxu1 %v1826_v43  ;;  %v1890_v56 = vcombine.high %v132_v36, %v136_v37  ;;  %v140_v43 = vld [vmem:[#allocation2 + $0x358] sm:$0xff]  ;;  %v1889_v46 = vcombine.low %v132_v36, %v136_v37  ;;  %v2138_v36 = vld [vmem:[%s2515_s2 + $0x140] sm:$0xff]  }
  0x65   :  { %v2136_v34 = vld [vmem:[%s2515_s2 + $0x38] sm:$0xff]   ;;  %v2139_v37 = vld [vmem:[%s2515_s2 + $0x1c0] sm:$0xff]  }
  0x66   :  { %v2137_v35 = vld [vmem:[%s2515_s2 + $0xb8] sm:$0xff]  }
  0x67   :  { %906 = vmatpush1.bf16.msra.mxu0 %v1823_v44  ;;  %949 = vmatpush1.bf16.msra.mxu1 %v1825_v47  ;;  %v144_v44 = vld [vmem:[#allocation2 + $0x378] sm:$0xff]  ;;  %v1896_v47 = vcombine.high %v139_v41, %v143_v42 }
  0x68   :  { %907 = vmatprep.subr.bf16.mxu0 %v1832_v48  ;;  %950 = vmatprep.subr.bf16.mxu1 %v1834_v51  ;;  %v1898_v48 = vcombine.high %v140_v43, %v144_v44  ;;  %v148_v51 = vld [vmem:[#allocation2 + $0x398] sm:$0xff]  ;;  %v1897_v54 = vcombine.low %v140_v43, %v144_v44 }
  0x6b   :  { %908 = vmatpush1.bf16.msra.mxu0 %v1831_v52  ;;  %951 = vmatpush1.bf16.msra.mxu1 %v1833_v55  ;;  %v152_v52 = vld [vmem:[#allocation2 + $0x3b8] sm:$0xff]  ;;  %v1904_v55 = vcombine.high %v147_v49, %v151_v50  ;;  %v2142_v49 = vld [vmem:[%s2515_s2 + $0x148] sm:$0xff]  }
  0x6c   :  { %909 = vmatprep.subr.bf16.mxu0 %v1840_v57  ;;  %952 = vmatprep.subr.bf16.mxu1 %v1842_v60  ;;  %v1906_v57 = vcombine.high %v148_v51, %v152_v52  ;;  %v156_v60 = vld [vmem:[#allocation2 + $0x3d8] sm:$0xff]  ;;  %v1905_v63 = vcombine.low %v148_v51, %v152_v52  ;;  %v2143_v50 = vld [vmem:[%s2515_s2 + $0x1c8] sm:$0xff]  }
  0x6d   :  { %v2144_v51 = vld [vmem:[%s2515_s2 + $0x108] sm:$0xff]  }
  0x6e   :  { %v2145_v52 = vld [vmem:[%s2515_s2 + $0x188] sm:$0xff]  }
  0x6f   :  { %910 = vmatpush1.bf16.msra.mxu0 %v1839_v61  ;;  %953 = vmatpush1.bf16.msra.mxu1 %v1841_v0  ;;  %v160_v61 = vld [vmem:[#allocation2 + $0x3f8] sm:$0xff]  ;;  %v1912_v0 = vcombine.high %v155_v58, %v159_v59 }
  0x70   :  { %911 = vmatprep.subr.bf16.mxu0 %v1848_v1  ;;  %954 = vmatprep.subr.bf16.mxu1 %v1850_v4  ;;  %v1914_v1 = vcombine.high %v156_v60, %v160_v61  ;;  %v1913_v3 = vcombine.low %v156_v60, %v160_v61  ;;  %v2106_v4 = vld [vmem:[%s2515_s2 + $0x40] sm:$0xff]   ;;  %v2150_v58 = vld [vmem:[%s2515_s2 + $0x158] sm:$0xff]  }
  0x71   :  { %v2151_v59 = vld [vmem:[%s2515_s2 + $0x1d8] sm:$0xff]  }
  0x72   :  { %v2152_v60 = vld [vmem:[%s2515_s2 + $0x118] sm:$0xff]  }
  0x73   :  { %912 = vmatpush1.bf16.msra.mxu0 %v1847_v5  ;;  %955 = vmatpush1.bf16.msra.mxu1 %v1849_v9  ;;  %v2107_v5 = vld [vmem:[%s2515_s2 + $0xc0] sm:$0xff]   ;;  %v2110_v9 = vld [vmem:[%s2515_s2 + $0x48] sm:$0xff]   ;;  %v2153_v61 = vld [vmem:[%s2515_s2 + $0x198] sm:$0xff]  }
  0x74   :  { %913 = vmatprep.subr.bf16.mxu0 %v1856_v10  ;;  %956 = vmatprep.subr.bf16.mxu1 %v1858_v11  ;;  %v2111_v10 = vld [vmem:[%s2515_s2 + $0xc8] sm:$0xff]  }
  0x75   :  { %v2112_v11 = vld [vmem:[%s2515_s2 + $0x8] sm:$0xff]  }
  0x77   :  { %914 = vmatpush1.bf16.msra.mxu0 %v1855_v14  ;;  %957 = vmatpush1.bf16.msra.mxu1 %v1857_v15  ;;  %v2116_v14 = vld [vmem:[%s2515_s2 + $0x10] sm:$0xff]  }
  0x78   :  { %915 = vmatprep.subr.bf16.mxu0 %v1864_v16  ;;  %958 = vmatprep.subr.bf16.mxu1 %v1866_v17  ;;  %v2117_v15 = vld [vmem:[%s2515_s2 + $0x90] sm:$0xff]   ;;  %v2118_v16 = vld [vmem:[%s2515_s2 + $0x58] sm:$0xff]  }
  0x79   :  { %v2119_v17 = vld [vmem:[%s2515_s2 + $0xd8] sm:$0xff]  }
  0x7b   :  { %916 = vmatpush1.bf16.msra.mxu0 %v1863_v22  ;;  %959 = vmatpush1.bf16.msra.mxu1 %v1865_v23  ;;  %v2124_v22 = vld [vmem:[%s2515_s2 + $0x20] sm:$0xff]  }
  0x7c   :  { %917 = vmatprep.subr.bf16.mxu0 %v1872_v24  ;;  %960 = vmatprep.subr.bf16.mxu1 %v1874_v25  ;;  %v2125_v23 = vld [vmem:[%s2515_s2 + $0xa0] sm:$0xff]   ;;  %v2126_v24 = vld [vmem:[%s2515_s2 + $0x68] sm:$0xff]  }
  0x7d   :  { %v2127_v25 = vld [vmem:[%s2515_s2 + $0xe8] sm:$0xff]  }
  0x7f   :  { %918 = vmatpush1.bf16.msra.mxu0 %v1871_v30  ;;  %961 = vmatpush1.bf16.msra.mxu1 %v1873_v31  ;;  %v2132_v30 = vld [vmem:[%s2515_s2 + $0x30] sm:$0xff]  }
  0x80   :  { %919 = vmatprep.subr.bf16.mxu0 %v1880_v32  ;;  %962 = vmatprep.subr.bf16.mxu1 %v1882_v33  ;;  %v2133_v31 = vld [vmem:[%s2515_s2 + $0xb0] sm:$0xff]   ;;  %v2134_v32 = vld [vmem:[%s2515_s2 + $0x78] sm:$0xff]  }
  0x81   :  { %v2135_v33 = vld [vmem:[%s2515_s2 + $0xf8] sm:$0xff]  }
  0x83   :  { %920 = vmatpush1.bf16.msra.mxu0 %v1879_v38  ;;  %963 = vmatpush1.bf16.msra.mxu1 %v1881_v39 }
  0x84   :  { %921 = vmatprep.subr.bf16.mxu0 %v1888_v40  ;;  %964 = vmatprep.subr.bf16.mxu1 %v1890_v56 }
  0x87   :  { %922 = vmatpush1.bf16.msra.mxu0 %v1887_v45  ;;  %965 = vmatpush1.bf16.msra.mxu1 %v1889_v46  ;;  %v2140_v46 = vld [vmem:[%s2515_s2 + $0x100] sm:$0xff]  }
  0x88   :  { %923 = vmatprep.subr.bf16.mxu0 %v1896_v47  ;;  %966 = vmatprep.subr.bf16.mxu1 %v1898_v48  ;;  %v2197_v47 = vmov 1.0|1.0   ;;  %v2141_v48 = vld [vmem:[%s2515_s2 + $0x180] sm:$0xff]  }
  0x8b   :  { %924 = vmatpush1.bf16.msra.mxu0 %v1895_v53  ;;  %967 = vmatpush1.bf16.msra.mxu1 %v1897_v54  ;;  %v2146_v53 = vld [vmem:[%s2515_s2 + $0x150] sm:$0xff]  }
  0x8c   :  { %925 = vmatprep.subr.bf16.mxu0 %v1904_v55  ;;  %968 = vmatprep.subr.bf16.mxu1 %v1906_v57  ;;  %v2147_v54 = vld [vmem:[%s2515_s2 + $0x1d0] sm:$0xff]  }
  0x8d   :  { %v2148_v55 = vld [vmem:[%s2515_s2 + $0x110] sm:$0xff]  }
  0x8e   :  { %v2149_v57 = vld [vmem:[%s2515_s2 + $0x190] sm:$0xff]  }
  0x8f   :  { %926 = vmatpush1.bf16.msra.mxu0 %v1903_v62  ;;  %969 = vmatpush1.bf16.msra.mxu1 %v1905_v63  ;;  %v2154_v62 = vld [vmem:[%s2515_s2 + $0x160] sm:$0xff]  }
  0x90   :  { %927 = vmatprep.subr.bf16.mxu0 %v1912_v0  ;;  %970 = vmatprep.subr.bf16.mxu1 %v1914_v1  ;;  %v2155_v63 = vld [vmem:[%s2515_s2 + $0x1e0] sm:$0xff]  }
  0x91   :  { %v2156_v0 = vld [vmem:[%s2515_s2 + $0x120] sm:$0xff]  }
  0x92   :  { %v2157_v1 = vld [vmem:[%s2515_s2 + $0x1a0] sm:$0xff]  }
  0x93   :  { %928 = vmatpush1.bf16.msra.mxu0 %v1911_v2  ;;  %971 = vmatpush1.bf16.msra.mxu1 %v1913_v3  ;;  %v2158_v2 = vld [vmem:[%s2515_s2 + $0x168] sm:$0xff]  }
  0x94   :  { %2011 = vmatprep.subr.bf16.mxu0 %v2106_v4  ;;  %2033 = vmatprep.subr.bf16.mxu1 %v2107_v5  ;;  %v2159_v3 = vld [vmem:[%s2515_s2 + $0x1e8] sm:$0xff]  }
  0x95   :  { %v2160_v4 = vld [vmem:[%s2515_s2 + $0x128] sm:$0xff]  }
  0x96   :  { %930 = vmatmul.mubr.bf16.vlgmr.msra.gmra.mrb[4].mxu0 %v2245_v7  ;;  %973 = vmatmul.mubr.bf16.vlgmr.msra.gmra.mrb[4].mxu1 %v2245_v7  ;;  %v2115_v7 = vld [vmem:[%s2515_s2 + $0xd0] sm:$0xff]   ;;  %v2161_v5 = vld [vmem:[%s2515_s2 + $0x1a8] sm:$0xff]  }
  0x97   :  { %2012 = vmatpush3.bf16.msra.mxu0 %v2108_v6  ;;  %2034 = vmatpush3.bf16.msra.mxu1 %v2109_v8  ;;  %v2162_v6 = vld [vmem:[%s2515_s2 + $0x170] sm:$0xff]  }
  0x98   :  { %2013 = vmatprep.subr.bf16.mxu0 %v2110_v9  ;;  %2035 = vmatprep.subr.bf16.mxu1 %v2111_v10  ;;  %v2163_v8 = vld [vmem:[%s2515_s2 + $0x1f0] sm:$0xff]  }
  0x99   :  { %v2164_v9 = vld [vmem:[%s2515_s2 + $0x130] sm:$0xff]  }
  0x9a   :  { %v2165_v10 = vld [vmem:[%s2515_s2 + $0x1b0] sm:$0xff]  }
  0x9b   :  { %2014 = vmatpush3.bf16.msra.mxu0 %v2112_v11  ;;  %2036 = vmatpush3.bf16.msra.mxu1 %v2113_v12  ;;  %v2166_v11 = vld [vmem:[%s2515_s2 + $0x178] sm:$0xff]  }
  0x9c   :  { %2015 = vmatprep.subr.bf16.mxu0 %v2114_v13  ;;  %2037 = vmatprep.subr.bf16.mxu1 %v2115_v7  ;;  %v2167_v12 = vld [vmem:[%s2515_s2 + $0x1f8] sm:$0xff]  }
  0x9d   :  { %v2168_v13 = vld [vmem:[%s2515_s2 + $0x138] sm:$0xff]  }
  0x9e   :  { %v2169_v7 = vld [vmem:[%s2515_s2 + $0x1b8] sm:$0xff]  }
  0x9f   :  { %2016 = vmatpush3.bf16.msra.mxu0 %v2116_v14  ;;  %2038 = vmatpush3.bf16.msra.mxu1 %v2117_v15 }
  0xa0   :  { %2017 = vmatprep.subr.bf16.mxu0 %v2118_v16  ;;  %2039 = vmatprep.subr.bf16.mxu1 %v2119_v17 }
  0xa3   :  { %2018 = vmatpush3.bf16.msra.mxu0 %v2120_v18  ;;  %2040 = vmatpush3.bf16.msra.mxu1 %v2121_v19 }
  0xa4   :  { %2019 = vmatprep.subr.bf16.mxu0 %v2122_v20  ;;  %2041 = vmatprep.subr.bf16.mxu1 %v2123_v21 }
  0xa7   :  { %2020 = vmatpush3.bf16.msra.mxu0 %v2124_v22  ;;  %2042 = vmatpush3.bf16.msra.mxu1 %v2125_v23 }
  0xa8   :  { %2021 = vmatprep.subr.bf16.mxu0 %v2126_v24  ;;  %2043 = vmatprep.subr.bf16.mxu1 %v2127_v25 }
  0xab   :  { %2022 = vmatpush3.bf16.msra.mxu0 %v2128_v26  ;;  %2044 = vmatpush3.bf16.msra.mxu1 %v2129_v27 }
  0xac   :  { %2023 = vmatprep.subr.bf16.mxu0 %v2130_v28  ;;  %2045 = vmatprep.subr.bf16.mxu1 %v2131_v29 }
  0xaf   :  { %2024 = vmatpush3.bf16.msra.mxu0 %v2132_v30  ;;  %2046 = vmatpush3.bf16.msra.mxu1 %v2133_v31 }
  0xb0   :  { %2025 = vmatprep.subr.bf16.mxu0 %v2134_v32  ;;  %2047 = vmatprep.subr.bf16.mxu1 %v2135_v33 }
  0xb3   :  { %2026 = vmatpush3.bf16.msra.mxu0 %v2136_v34  ;;  %2048 = vmatpush3.bf16.msra.mxu1 %v2137_v35 }
  0xb4   :  { %2055 = vmatprep.subr.bf16.mxu0 %v2138_v36  ;;  %2077 = vmatprep.subr.bf16.mxu1 %v2139_v37 }
 0x129   :  { %v845_v38 = vpop.f32.mrb[0].mxu0  ;;  %v888_v39 = vpop.f32.mrb[0].mxu1 }
 0x12a   :  { %vm983_vm0 = vcmp.gt.f32.partialorder %v845_v38, 0.0  ;;  %1720 = vmax.xlane.f32.xlu0 %v845_v38  ;;  %v847_v40 = vpop.f32.mrb[1].mxu0  ;;  %vm985_vm1 = vcmp.gt.f32.partialorder %v888_v39, 0.0  ;;  %v890_v56 = vpop.f32.mrb[1].mxu1 }
 0x12b   :  { %1727 = vmax.xlane.f32.xlu1 %v847_v40  ;;  %v849_v41 = vpop.f32.mrb[2].mxu0  ;;  %v892_v42 = vpop.f32.mrb[2].mxu1  ;;  %vm986_vm3 = vcmp.gt.f32.partialorder %v890_v56, 0.0  ;;  %vm984_vm7 = vcmp.gt.f32.partialorder %v847_v40, 0.0 }
 0x12c   :  { %vm991_vm2 = vcmp.gt.f32.partialorder %v849_v41, 0.0  ;;  %v851_v43 = vpop.f32.mrb[3].mxu0  ;;  %vm993_vm4 = vcmp.gt.f32.partialorder %v892_v42, 0.0  ;;  %v894_v45 = vpop.f32.mrb[3].mxu1 }
 0x12d   :  { %vm2355_vm5 = vmpackc.low %vm991_vm2, %vm983_vm0  ;;  %vm992_vm6 = vcmp.gt.f32.partialorder %v851_v43, 0.0  ;;  %vm994_vm9 = vcmp.gt.f32.partialorder %v894_v45, 0.0 }
 0x12e   :  { %vm2001_vm8 = vmpackc.low %vm993_vm4, %vm985_vm1  ;;  %1734 = vmax.xlane.f32.xlu0 %v888_v39 }
 0x12f   :  { %vm1995_vm10 = vmpackc.low %vm992_vm6, %vm984_vm7  ;;  %1736 = vmax.xlane.f32.xlu1 %v892_v42 }
 0x130   :  { %vm1999_vm11 = vmpackc.low %vm994_vm9, %vm986_vm3  ;;  %1996 = vmatprep.mubr.msk.bf16.mxu0 %vm1995_vm10, %v2197_v47  ;;  %vm1731_vm9 = vcmask 15368   ;;  %vm1738_vm10 = vcmask 23568  }
 0x131   :  { %2000 = vmatprep.mubr.msk.bf16.mxu1 %vm1999_vm11, %v2197_v47  ;;  %1998 = vmatmul.mubr.msk.bf16.vlgmr.msra.gmra.mrb[8].mxu0 %vm2355_vm5, %v2197_v47  ;;  %vm1745_vm11 = vcmask 31768  }
 0x132   :  { %2002 = vmatmul.mubr.msk.bf16.vlgmr.msra.gmra.mrb[8].mxu1 %vm2001_vm8, %v2197_v47  ;;  %1741 = vmax.xlane.f32.xlu0 %v890_v56  ;;  %vm1724_vm8 = vcmask 7168  }
 0x133   :  { %1729 = vmax.xlane.f32.xlu1 %v851_v43  ;;  %2056 = vmatpush3.bf16.msra.mxu0 %v2140_v46 }
 0x134   :  { %2078 = vmatpush3.bf16.msra.mxu1 %v2141_v48  ;;  %2057 = vmatprep.subr.bf16.mxu0 %v2142_v49 }
 0x135   :  { %2079 = vmatprep.subr.bf16.mxu1 %v2143_v50 }
 0x136   :  { %1722 = vmax.xlane.f32.xlu0 %v849_v41 }
 0x137   :  { %1743 = vmax.xlane.f32.xlu1 %v894_v45  ;;  %2058 = vmatpush3.bf16.msra.mxu0 %v2144_v51 }
 0x138   :  { %2080 = vmatpush3.bf16.msra.mxu1 %v2145_v52  ;;  %2059 = vmatprep.subr.bf16.mxu0 %v2146_v53 }
 0x139   :  { %2081 = vmatprep.subr.bf16.mxu1 %v2147_v54 }
 0x13b   :  { %2060 = vmatpush3.bf16.msra.mxu0 %v2148_v55 }
 0x13c   :  { %2082 = vmatpush3.bf16.msra.mxu1 %v2149_v57  ;;  %2061 = vmatprep.subr.bf16.mxu0 %v2150_v58 }
 0x13d   :  { %2083 = vmatprep.subr.bf16.mxu1 %v2151_v59 }
 0x13f   :  { %2062 = vmatpush3.bf16.msra.mxu0 %v2152_v60 }
 0x140   :  { %2084 = vmatpush3.bf16.msra.mxu1 %v2153_v61  ;;  %2063 = vmatprep.subr.bf16.mxu0 %v2154_v62 }
 0x141   :  { %2085 = vmatprep.subr.bf16.mxu1 %v2155_v63 }
 0x143   :  { %2064 = vmatpush3.bf16.msra.mxu0 %v2156_v0 }
 0x144   :  { %2086 = vmatpush3.bf16.msra.mxu1 %v2157_v1  ;;  %2065 = vmatprep.subr.bf16.mxu0 %v2158_v2 }
 0x145   :  { %2087 = vmatprep.subr.bf16.mxu1 %v2159_v3 }
 0x147   :  { %2066 = vmatpush3.bf16.msra.mxu0 %v2160_v4 }
 0x148   :  { %2088 = vmatpush3.bf16.msra.mxu1 %v2161_v5  ;;  %2067 = vmatprep.subr.bf16.mxu0 %v2162_v6 }
 0x149   :  { %2089 = vmatprep.subr.bf16.mxu1 %v2163_v8 }
 0x14b   :  { %2068 = vmatpush3.bf16.msra.mxu0 %v2164_v9 }
 0x14c   :  { %2090 = vmatpush3.bf16.msra.mxu1 %v2165_v10  ;;  %2069 = vmatprep.subr.bf16.mxu0 %v2166_v11 }
 0x14d   :  { %2091 = vmatprep.subr.bf16.mxu1 %v2167_v12 }
 0x14f   :  { %2070 = vmatpush3.bf16.msra.mxu0 %v2168_v13 }
 0x150   :  { %2092 = vmatpush3.bf16.msra.mxu1 %v2169_v7 }
 0x169   :  { %v931_v14 = vpop.f32.mrb[4].mxu0  ;;  %v974_v15 = vpop.f32.mrb[4].mxu1 }
 0x16a   :  { %1748 = vmax.xlane.f32.xlu0 %v931_v14  ;;  %v933_v16 = vpop.f32.mrb[5].mxu0  ;;  %vm989_vm12 = vcmp.gt.f32.partialorder %v974_v15, 0.0  ;;  %v976_v17 = vpop.f32.mrb[5].mxu1  ;;  %vm987_vm13 = vcmp.gt.f32.partialorder %v931_v14, 0.0 }
 0x16b   :  { %v935_v18 = vpop.f32.mrb[6].mxu0  ;;  %vm990_vm14 = vcmp.gt.f32.partialorder %v976_v17, 0.0  ;;  %v978_v19 = vpop.f32.mrb[6].mxu1  ;;  %vm988_vm5 = vcmp.gt.f32.partialorder %v933_v16, 0.0 }
 0x16c   :  { %vm995_vm15 = vcmp.gt.f32.partialorder %v935_v18, 0.0  ;;  %1750 = vmax.xlane.f32.xlu1 %v935_v18  ;;  %v937_v20 = vpop.f32.mrb[7].mxu0  ;;  %vm997_vm1 = vcmp.gt.f32.partialorder %v978_v19, 0.0  ;;  %v980_v21 = vpop.f32.mrb[7].mxu1 }
 0x16d   :  { %vm2005_vm0 = vmpackc.low %vm995_vm15, %vm987_vm13  ;;  %vm996_vm2 = vcmp.gt.f32.partialorder %v937_v20, 0.0  ;;  %vm998_vm4 = vcmp.gt.f32.partialorder %v980_v21, 0.0  ;;  %vm1759_vm13 = vcmask 48168   ;;  %vm1773_vm15 = vcmask 64568  }
 0x16e   :  { %vm2009_vm3 = vmpackc.low %vm997_vm1, %vm989_vm12  ;;  %1762 = vmax.xlane.f32.xlu0 %v974_v15  ;;  %vm1752_vm12 = vcmask 39968  }
 0x16f   :  { %vm2007_vm6 = vmpackc.low %vm998_vm4, %vm990_vm14  ;;  %vm1766_vm14 = vcmask 56368  }
 0x170   :  { %vm2003_vm7 = vmpackc.low %vm996_vm2, %vm988_vm5  ;;  %2008 = vmatprep.mubr.msk.bf16.mxu1 %vm2007_vm6, %v2197_v47  ;;  %1764 = vmax.xlane.f32.xlu1 %v978_v19 }
 0x171   :  { %2004 = vmatprep.mubr.msk.bf16.mxu0 %vm2003_vm7, %v2197_v47  ;;  %2010 = vmatmul.mubr.msk.bf16.vlgmr.msra.gmra.mrb[12].mxu1 %vm2009_vm3, %v2197_v47 }
 0x172   :  { %2006 = vmatmul.mubr.msk.bf16.vlgmr.msra.gmra.mrb[12].mxu0 %vm2005_vm0, %v2197_v47  ;;  %1755 = vmax.xlane.f32.xlu0 %v933_v16  ;;  %vm1717_vm0 = vcmask 64512  }
 0x174   :  { %1757 = vmax.xlane.f32.xlu1 %v937_v20 }
 0x176   :  { %1769 = vmax.xlane.f32.xlu0 %v976_v17 }
 0x178   :  { %1771 = vmax.xlane.f32.xlu1 %v980_v21 }
 0x1b7   :  { %v1721_v22 = vpop.xlane.xlu0 %1720 }
 0x1b8   :  { %1725 = vst.msk [vmem:[%s2517_s4] sm:$0xff] %vm1724_vm8, %v1721_v22  ;;  %v1728_v23 = vpop.xlane.xlu1 %1727 }
 0x1b9   :  { %1732 = vst.msk [vmem:[%s2517_s4] sm:$0xff] %vm1731_vm9, %v1728_v23 }
 0x1bb   :  { %v1735_v24 = vpop.xlane.xlu0 %1734 }
 0x1bc   :  { %1739 = vst.msk [vmem:[%s2517_s4] sm:$0xff] %vm1738_vm10, %v1735_v24  ;;  %v1737_v25 = vpop.xlane.xlu1 %1736 }
 0x1bf   :  { %v1742_v26 = vpop.xlane.xlu0 %1741 }
 0x1c0   :  { %1746 = vst.msk [vmem:[%s2517_s4] sm:$0xff] %vm1745_vm11, %v1742_v26  ;;  %v1730_v27 = vpop.xlane.xlu1 %1729 }
 0x1c3   :  { %v1723_v28 = vpop.xlane.xlu0 %1722 }
 0x1c4   :  { %1726 = vst.msk [vmem:[%s2517_s4 + $0x8] sm:$0xff] %vm1724_vm8, %v1723_v28  ;;  %v1744_v29 = vpop.xlane.xlu1 %1743 }
 0x1c5   :  { %1733 = vst.msk [vmem:[%s2517_s4 + $0x8] sm:$0xff] %vm1731_vm9, %v1730_v27 }
 0x1c6   :  { %1740 = vst.msk [vmem:[%s2517_s4 + $0x8] sm:$0xff] %vm1738_vm10, %v1737_v25 }
 0x1c7   :  { %1747 = vst.msk [vmem:[%s2517_s4 + $0x8] sm:$0xff] %vm1745_vm11, %v1744_v29 }
 0x1f7   :  { %v1749_v30 = vpop.xlane.xlu0 %1748 }
 0x1f8   :  { %1753 = vst.msk [vmem:[%s2517_s4] sm:$0xff] %vm1752_vm12, %v1749_v30 }
 0x1f9   :  { %v1751_v31 = vpop.xlane.xlu1 %1750 }
 0x1fa   :  { %1754 = vst.msk [vmem:[%s2517_s4 + $0x8] sm:$0xff] %vm1752_vm12, %v1751_v31 }
 0x1fb   :  { %v1763_v32 = vpop.xlane.xlu0 %1762 }
 0x1fd   :  { %v1765_v33 = vpop.xlane.xlu1 %1764 }
 0x1ff   :  { %v1756_v34 = vpop.xlane.xlu0 %1755 }
 0x200   :  { %1760 = vst.msk [vmem:[%s2517_s4] sm:$0xff] %vm1759_vm13, %v1756_v34 }
 0x201   :  { %v1758_v35 = vpop.xlane.xlu1 %1757  ;;  %1767 = vst.msk [vmem:[%s2517_s4] sm:$0xff] %vm1766_vm14, %v1763_v32 }
 0x202   :  { %1761 = vst.msk [vmem:[%s2517_s4 + $0x8] sm:$0xff] %vm1759_vm13, %v1758_v35 }
 0x203   :  { %v1770_v36 = vpop.xlane.xlu0 %1769  ;;  %1768 = vst.msk [vmem:[%s2517_s4 + $0x8] sm:$0xff] %vm1766_vm14, %v1765_v33 }
 0x204   :  { %1774 = vst.msk [vmem:[%s2517_s4] sm:$0xff] %vm1773_vm15, %v1770_v36  ;;  %v2027_v37 = vpop.f32.mrb[8].mxu0 }
 0x205   :  { %v2049_v38 = vpop.f32.mrb[8].mxu1  ;;  %v2028_v39 = vpop.f32.mrb[9].mxu0 }
 0x206   :  { %v2029_v40 = vadd.f32 %v2028_v39, %v2027_v37  ;;  %v2050_v56 = vpop.f32.mrb[9].mxu1  ;;  %v1772_v41 = vpop.xlane.xlu1 %1771 }
 0x207   :  { %v2051_v42 = vadd.f32 %v2050_v56, %v2049_v38  ;;  %v2052_v43 = vpop.f32.mrb[10].mxu1  ;;  %1775 = vst.msk [vmem:[%s2517_s4 + $0x8] sm:$0xff] %vm1773_vm15, %v1772_v41  ;;  %v2030_v44 = vpop.f32.mrb[10].mxu0 }
 0x208   :  { %v2031_v45 = vpop.f32.mrb[11].mxu0  ;;  %v2053_v46 = vpop.f32.mrb[11].mxu1 }
 0x209   :  { %v1627_v47 = vadd.f32 %v2051_v42, %v2029_v40  ;;  %v2032_v48 = vadd.f32 %v2031_v45, %v2030_v44  ;;  %v2054_v49 = vadd.f32 %v2053_v46, %v2052_v43 }
 0x20b   :  { %v1630_v50 = vadd.f32 %v2054_v49, %v2032_v48 }
 0x244   :  { %v2093_v51 = vpop.f32.mrb[12].mxu1 }
 0x245   :  { %v2071_v52 = vpop.f32.mrb[12].mxu0  ;;  %v2094_v53 = vpop.f32.mrb[13].mxu1 }
 0x246   :  { %v2072_v54 = vpop.f32.mrb[13].mxu0  ;;  %v2095_v55 = vadd.f32 %v2094_v53, %v2093_v51  ;;  %v2096_v57 = vpop.f32.mrb[14].mxu1 }
 0x247   :  { %v2073_v58 = vadd.f32 %v2072_v54, %v2071_v52  ;;  %v2074_v59 = vpop.f32.mrb[14].mxu0  ;;  %v2097_v60 = vpop.f32.mrb[15].mxu1 }
 0x248   :  { %v2075_v61 = vpop.f32.mrb[15].mxu0  ;;  %v2098_v62 = vadd.f32 %v2097_v60, %v2096_v57 }
 0x249   :  { %v1668_v63 = vadd.f32 %v2073_v58, %v1627_v47  ;;  %v2076_v0 = vadd.f32 %v2075_v61, %v2074_v59 }
 0x24b   :  { %v1709_v1 = vadd.f32 %v2095_v55, %v1668_v63  ;;  %v1671_v2 = vadd.f32 %v2076_v0, %v1630_v50 }
 0x24d   :  { %v1715_v3 = vmul.f32 0.0078125, %v1709_v1  ;;  %v1712_v4 = vadd.f32 %v2098_v62, %v1671_v2 }
 0x24f   :  { %1718 = vst.msk [vmem:[%s2516_s3] sm:$0xff] %vm1717_vm0, %v1715_v3  ;;  %v1716_v5 = vmul.f32 0.0078125, %v1712_v4 }
 0x251   :  { %1719 = vst.msk [vmem:[%s2516_s3 + $0x8] sm:$0xff] %vm1717_vm0, %v1716_v5 }
 0x252   :  { %1784 = vsyncpa [#allocation3], 1 }

</bundles_post_ra>
